<compile_context>
chip_gen: v7x
topology: tpu7x:2x2x1
jax: 0.10.0
libtpu: 0.0.40
codegen_flags: <defaults>
</compile_context>

<pallas_src>
import jax
import jax.numpy as jnp
from jax import lax
from jax.experimental import pallas as pl
from jax.experimental.pallas import tpu as pltpu

EMBEDDING_SIZE = 128   # fixed by SimiModel.EMBEDDING_SIZE
TN = 1024              # index pairs per grid step (multiple of 128)


def simi_kernel(idx_ref, embt_ref, out_ref):
    """One grid step: TN index pairs -> TN similarity scalars.

    idx_ref  : (1, 2*TN) int32   VMEM   [x1 ids for this tile | x2 ids for this tile]
    embt_ref : (E, V)    float32 VMEM   transposed table, whole-array resident
    out_ref  : (1, TN)   float32 VMEM   lane-dense output row
    """
    embt = embt_ref[...]                           # (E, V)
    idx = idx_ref[...]                             # (1, 2*TN)
    v = embt.shape[1]
    two_tn = idx.shape[1]
    tn = two_tn // 2

    # One-hot via broadcast: (V, 1) iota column vs (1, 2*TN) index row.
    # No full (V, 2*TN) int32 iota is materialized.
    iota_col = lax.broadcasted_iota(jnp.int32, (v, 1), 0)      # (V, 1)
    oh = (iota_col == idx).astype(embt.dtype)                  # (V, 2*TN)

    # Fused gather of both embedding tiles on the MXU:
    # (E, V) @ (V, 2*TN) -> (E, 2*TN).
    g = lax.dot_general(embt, oh, (((1,), (0,)), ((), ())),
                        preferred_element_type=jnp.float32)    # (E, 2*TN)

    e1 = g[:, :tn]                                 # (E, TN) gathered x1 embeddings
    e2 = g[:, tn:]                                 # (E, TN) gathered x2 embeddings

    # Similarity: elementwise product + sublane-axis reduction -> lane-dense
    # (1, TN) row, stored unmasked.
    out_ref[...] = jnp.sum(e1 * e2, axis=0, keepdims=True)


def simi_forward(emb_t: jax.Array, x1: jax.Array, x2: jax.Array) -> jax.Array:
    """Pallas implementation of SimiModel.forward.

    emb_t : (EMBEDDING_SIZE, id_num) float32 -- the embedding table, already
            transposed (hoist / cache this transpose once per table).
    x1, x2 : integer arrays of identical arbitrary shape.
    returns float32 array with the same shape as x1.
    """
    assert x1.shape == x2.shape
    e, v = emb_t.shape
    assert e == EMBEDDING_SIZE

    saved_shape = x1.shape
    n = int(x1.size)

    # Flatten + pad the index streams to a multiple of TN. Pad with id 0
    # (requires id_num >= 1); padded outputs are discarded below.
    npad = ((n + TN - 1) // TN) * TN
    num_tiles = npad // TN
    x1f = jnp.pad(x1.reshape(-1).astype(jnp.int32), (0, npad - n))
    x2f = jnp.pad(x2.reshape(-1).astype(jnp.int32), (0, npad - n))

    # Pack per-tile as [x1 tile i | x2 tile i] into a single lane-dense row:
    # layout plumbing done once in XLA, not per kernel step.
    idx = jnp.concatenate(
        [x1f.reshape(num_tiles, TN), x2f.reshape(num_tiles, TN)], axis=1
    ).reshape(1, 2 * npad)                                     # (1, 2*npad)

    # Rough per-step VMEM: resident table + one-hot + gathered tiles +
    # double-buffered idx/out.  Must stay within the v7x 64 MiB/TC budget.
    vmem_est = 4 * (e * v + v * 2 * TN + e * 2 * TN) + 2 * 4 * (2 * TN + TN)
    assert vmem_est < 48 * 1024 * 1024, (
        "vocab too large for the resident-table one-hot path"
    )  # TODO(synk): blocked-V accumulation fallback for large vocabularies.

    out = pl.pallas_call(
        simi_kernel,
        out_shape=jax.ShapeDtypeStruct((1, npad), jnp.float32),
        grid_spec=pltpu.PrefetchScalarGridSpec(
            num_scalar_prefetch=0,
            grid=(num_tiles,),
            in_specs=[
                # Packed indices: one small lane-dense DMA per step.
                pl.BlockSpec((1, 2 * TN), lambda i: (0, i)),
                # Transposed table: whole array resident in VMEM, single-buffered.
                pl.BlockSpec(memory_space=pltpu.MemorySpace.VMEM),
            ],
            # Lane-dense output row: unmasked vst + contiguous HBM writeback.
            out_specs=pl.BlockSpec((1, TN), lambda i: (0, i)),
        ),
        compiler_params=pltpu.CompilerParams(
            # "parallel" lets v7x shard the tile loop across its 2 TensorCores;
            # no-op on v5e/v6e.
            dimension_semantics=("parallel",),
            vmem_limit_bytes=32 * 1024 * 1024,
        ),
    )(idx, emb_t)

    return out.reshape(-1)[:n].reshape(saved_shape)


if __name__ == "__main__":
    key = jax.random.PRNGKey(0)
    k_emb, k_x1, k_x2 = jax.random.split(key, 3)

    id_num = 64
    # nn.Embedding default init: N(0, 1)
    emb = jax.random.normal(k_emb, (id_num, EMBEDDING_SIZE), dtype=jnp.float32)
    # Hoisted / cached transposed layout (E, V) -- done once per table.
    emb_t = emb.T

    # x1/x2: arbitrary shape of ids; 2*24*32 = 1536 flattened -> padded to
    # 2048 -> 2 grid steps (exercises both the grid loop and the padded tail).
    x_shape = (2, 24, 32)
    x1 = jax.random.randint(k_x1, x_shape, 0, id_num, dtype=jnp.int32)
    x2 = jax.random.randint(k_x2, x_shape, 0, id_num, dtype=jnp.int32)

    out = simi_forward(emb_t, x1, x2)
    out = jax.block_until_ready(out)

    # Pure-JAX reference (same semantics as the PyTorch module).
    ref = jnp.sum(emb[x1.reshape(-1)] * emb[x2.reshape(-1)], axis=-1).reshape(x_shape)

    assert out.shape == x_shape, (out.shape, x_shape)
    assert jnp.allclose(out, ref, atol=1e-4, rtol=1e-4), float(jnp.max(jnp.abs(out - ref)))
    print("KERNEL_OK")
</pallas_src>

<mosaic_0001>
module attributes {stable_mosaic.version = 11 : i64} {
  func.func @simi_kernel(%arg0: i32, %arg1: memref<1x2048xi32, #tpu.memory_space<vmem>>, %arg2: memref<128x64xf32, #tpu.memory_space<vmem>>, %arg3: memref<1x1024xf32, #tpu.memory_space<vmem>>) attributes {dimension_semantics = [#tpu.dimension_semantics<parallel>], iteration_bounds = array<i64: 2>, scalar_prefetch = 0 : i64, scratch_operands = 0 : i64, tpu.core_type = #tpu.core_type<tc>, window_params = [{transform_indices = @transform_0, window_bounds = array<i64: 1, 2048>}, {pipeline_mode = #tpu.pipeline_mode<synchronous>, transform_indices = @transform_1, window_bounds = array<i64: 128, 64>}, {transform_indices = @transform_2, window_bounds = array<i64: 1, 1024>}]} {
    %c0 = arith.constant 0 : index
    %c0_0 = arith.constant 0 : index
    %0 = vector.load %arg2[%c0, %c0_0] : memref<128x64xf32, #tpu.memory_space<vmem>>, vector<128x64xf32>
    %c0_1 = arith.constant 0 : index
    %c0_2 = arith.constant 0 : index
    %1 = vector.load %arg1[%c0_1, %c0_2] : memref<1x2048xi32, #tpu.memory_space<vmem>>, vector<1x2048xi32>
    %2 = tpu.iota {dimensions = array<i32: 0>} : vector<64x1xi32>
    %3 = vector.broadcast %2 : vector<64x1xi32> to vector<64x2048xi32>
    %4 = vector.broadcast %1 : vector<1x2048xi32> to vector<64x2048xi32>
    %5 = arith.cmpi eq, %3, %4 : vector<64x2048xi32>
    %6 = arith.extui %5 : vector<64x2048xi1> to vector<64x2048xi32>
    %7 = arith.sitofp %6 : vector<64x2048xi32> to vector<64x2048xf32>
    %cst = arith.constant dense<0.000000e+00> : vector<128x2048xf32>
    %8 = tpu.matmul %0, %7, %cst {dimension_numbers = #tpu.dot_dimension_numbers<[1], [0], [0], [1], [0, 0, 1, 1], [], []>} : vector<128x64xf32>, vector<64x2048xf32>, vector<128x2048xf32> -> vector<128x2048xf32>
    %9 = vector.extract_strided_slice %8 {offsets = [0, 0], sizes = [128, 1024], strides = [1, 1]} : vector<128x2048xf32> to vector<128x1024xf32>
    %10 = vector.extract_strided_slice %8 {offsets = [0, 1024], sizes = [128, 1024], strides = [1, 1]} : vector<128x2048xf32> to vector<128x1024xf32>
    %11 = arith.mulf %9, %10 : vector<128x1024xf32>
    %cst_3 = arith.constant dense<0.000000e+00> : vector<1024xf32>
    %12 = vector.multi_reduction <add>, %11, %cst_3 [0] : vector<128x1024xf32> to vector<1024xf32>
    %13 = vector.shape_cast %12 : vector<1024xf32> to vector<1x1024xf32>
    %c0_4 = arith.constant 0 : index
    %c0_5 = arith.constant 0 : index
    %14 = vector.load %arg3[%c0_4, %c0_5] : memref<1x1024xf32, #tpu.memory_space<vmem>>, vector<1x1024xf32>
    tpu.vector_store %arg3[%c0_4, %c0_5], %13 {strides = array<i32>} : memref<1x1024xf32, #tpu.memory_space<vmem>>, vector<1x1024xf32>,
    return
  }
  func.func @transform_0(%arg0: i32) -> (i32, i32) {
    %c0_i32 = arith.constant 0 : i32
    %c0_i32_0 = arith.constant 0 : i32
    return %c0_i32, %arg0 : i32, i32
  }
  func.func @transform_1(%arg0: i32) -> (i32, i32) {
    %c0_i32 = arith.constant 0 : i32
    %c0_i32_0 = arith.constant 0 : i32
    %c0_i32_1 = arith.constant 0 : i32
    return %c0_i32, %c0_i32_0 : i32, i32
  }
  func.func @transform_2(%arg0: i32) -> (i32, i32) {
    %c0_i32 = arith.constant 0 : i32
    %c0_i32_0 = arith.constant 0 : i32
    return %c0_i32, %arg0 : i32, i32
  }
}

</mosaic_0001>

<bundles_post_ra>
// kernel: tpu_custom_call.1
= control target key start
LH: loop header
LB: loop body
LE: loop exit
PB: predicated region body
PF: predicated region fallthrough
CT: control target
= control target key end

     0   :  { %7 = vsyncpa [#allocation3], 0  ;;  %s4859_s0 = inlined_call_operand.vmem [shape: s32[1,4096], index: 0, kind: input, shape index: {}]   ;;  %s4860_s1 = inlined_call_operand.vmem [shape: f32[128,64], index: 1, kind: input, shape index: {}]   ;;  %s4861_s2 = inlined_call_operand.hbm [shape: f32[1,2048], index: 2, kind: output, shape index: {}]  }
   0x1   :  { %9 = vsyncpa [#allocation3 + $0x1], 0  ;;  %s3029_s9 = smov 0   ;;  %s3031_s10 = smov 0  }
   0x2   :  { %s3033_s11 = smov 0   ;;  %s3035_s12 = smov 0  }
   0x3 LB: > { %s3050_s13 = sadd.s32 4294967295, %s3008_s12   ;;  %s2380_s14 = sadd.s32 4294967294, %s3008_s12   ;;  %s3008_s12 = sphi %s3035_s12, %s5267_s12   ;;  %s3004_s11 = sphi %s3033_s11, %s5266_s11   ;;  %s3000_s10 = sphi %s3031_s10, %s5265_s10   ;;  %s2996_s9 = sphi %s3029_s9, %s5264_s9  }
   0x4   : > { %s3054_s15 = sadd.s32 1, %s3008_s12   ;;  %s69_s16 = sadd.s32 1, %s3004_s11 }
   0x5   : > { %s66_s17 = ssub.s32 %s3008_s12, %s3054_s15  ;;  %p79_p0 = scmp.ne.s32.totalorder %s3004_s11, %s3000_s10 }
   0x6   : > { %p67_p1 = scmp.eq.s32.totalorder %s66_s17, 0  ;;  %p80_p2 = scmp.eq.s32.totalorder %s3050_s13, 1 }
   0x7   : > { %p85_p3 = scmp.ne.s32.totalorder %s3000_s10, %s2996_s9  ;;  %p86_p4 = scmp.eq.s32.totalorder %s2380_s14, 1 }
   0x8   : > { %s3065_s18 = scalar_select %p67_p1, %s3004_s11, %s69_s16  }
   0x9   : > { %p3067_p5 = por %p80_p2, %p79_p0  ;;  %p3071_p6 = por %p86_p4, %p85_p3 }
   0xa   : > { %p2383_p7 = scmp.ge.s32.totalorder %s3008_s12, 1  ;;  %p115_p8 = scmp.lt.s32.totalorder %s3008_s12, 3 }
   0xc   : > { %p116_p9 = pnand %p2383_p7, %p115_p8 }
   0xe   : > { %119 = sbr.rel (%p116_p9) target bundleno = 559 (0x22f), region = 28 }
  0x15   : > { %s2385_s21 = sshll.u32 %s3050_s13, 4  ;;  %v160_v0 = vlaneseq  ;;  %v3010_v1 = vmov 0.0   ;;  %v3011_v15 = vmov 1.0|1.0   ;;  %v3300_v29 = vld [vmem:[%s4860_s1] sm:$0xff]  ;;  %v3373_v32 = vld [vmem:[%s4860_s1 + $0x8] sm:$0xff] }
  0x16   : > { %p137_p10 = scmp.lt.s32.totalorder %s2385_s21, 31  ;;  %730 = vmatprep.mubr.f32.mxu0 %v3010_v1  ;;  %891 = vmatprep.mubr.f32.mxu1 %v3010_v1  ;;  %v3430_v33 = vld [vmem:[%s4860_s1 + $0x10] sm:$0xff]  ;;  %v3499_v36 = vld [vmem:[%s4860_s1 + $0x18] sm:$0xff]  ;;  %v3574_v41 = vld [vmem:[%s4860_s1 + $0x20] sm:$0xff]  ;;  %v4893_v49 = vmov 0  ;;  %v4895_v50 = vmov 0 }
  0x17   : > { %v3080_v2 = vshrl.u32 %v160_v0, 7  ;;  %v3628_v43 = vld [vmem:[%s4860_s1 + $0x28] sm:$0xff]  ;;  %v3694_v48 = vld [vmem:[%s4860_s1 + $0x30] sm:$0xff]  ;;  %v4897_v51 = vmov 0  ;;  %v4902_v52 = vmov 0  ;;  %v3741_v53 = vld [vmem:[%s4860_s1 + $0x38] sm:$0xff] }
  0x18   : > { %s5269_s21 = smov (!%p137_p10, %s2385_s21), 31  ;;  %v4909_v55 = vmov 0  ;;  %v4911_v56 = vmov 0  ;;  %v4916_v57 = vmov 0  ;;  %v3784_v58 = vld [vmem:[%s4860_s1 + $0x40] sm:$0xff]  ;;  %v4921_v59 = vmov 0 }
  0x19   : > { %4866 = vst [vmem:[#allocation5_spill] sm:$0xff] %v3080_v2  ;;  %v175_v3 = vsub.s32 1, %v3080_v2  ;;  %v183_v4 = vsub.s32 3, %v3080_v2  ;;  %v171_v5 = vsub.s32 0, %v3080_v2  ;;  %s3088_s24 = scalar_lea.vmem %s4859_s0, %s5269_s21  ;;  %v3091_v6 = vadd.s32 8, %v3080_v2  ;;  %v3830_v63 = vld [vmem:[%s4860_s1 + $0x48] sm:$0xff] }
  0x1a   : > { %v179_v7 = vsub.s32 2, %v3080_v2  ;;  %v3095_v8 = vld [vmem:[%s3088_s24] sm:$0xff]  ;;  %v3098_v9 = vadd.s32 16, %v3080_v2  ;;  %v3101_v10 = vadd.s32 24, %v3080_v2  ;;  %v3145_v16 = vadd.s32 32, %v3080_v2  ;;  %v3258_v28 = vld [vmem:[%s3088_s24 + $0x8] sm:$0xff] }
  0x1b   : > { %v3106_v11 = vrot.slane %v3095_v8, %v175_v3  ;;  %v3111_v12 = vrot.slane %v3095_v8, %v183_v4  ;;  %v3116_v13 = vrot.slane %v3095_v8, %v171_v5  ;;  %v3148_v17 = vadd.s32 40, %v3080_v2  ;;  %s133_s16 = sand.u32 1, %s3000_s10   ;;  %s2775_s21 = sshll.u32 %s3050_s13, 7 }
  0x1c   : > { %v3121_v14 = vrot.slane %v3095_v8, %v179_v7  ;;  %v3166_v18 = vadd.s32 48, %v3080_v2  ;;  %v191_v19 = vsub.s32 5, %v3080_v2  ;;  %v3175_v20 = vadd.s32 56, %v3080_v2  ;;  %s2384_s17 = sshll.u32 %s133_s16, 3  ;;  %s4817_s26 = scalar_lea.hbm %s4861_s2, %s2775_s21 }
  0x1d   : > { %vm234_vm0 = vcmp.eq.s32.totalorder %v3080_v2, %v3106_v11  ;;  %vm250_vm1 = vcmp.eq.s32.totalorder %v3091_v6, %v3106_v11  ;;  %vm236_vm2 = vcmp.eq.s32.totalorder %v3080_v2, %v3111_v12  ;;  %vm252_vm3 = vcmp.eq.s32.totalorder %v3091_v6, %v3111_v12  ;;  %s135_s22 = scalar_lea.vmem [#allocation2], %s2384_s17  ;;  %s2310_s13 = scalar_lea.sflag [#allocation3], %s133_s16 }
  0x1e   : > { %vm2776_vm4 = vmpackc.low %vm250_vm1, %vm234_vm0  ;;  %vm233_vm5 = vcmp.eq.s32.totalorder %v3080_v2, %v3116_v13  ;;  %vm249_vm6 = vcmp.eq.s32.totalorder %v3091_v6, %v3116_v13  ;;  %vm235_vm7 = vcmp.eq.s32.totalorder %v3080_v2, %v3121_v14  ;;  %vm251_vm8 = vcmp.eq.s32.totalorder %v3091_v6, %v3121_v14  ;;  %s2324_s23 = sshll.u32 %s135_s22, 4  ;;  %s3013_s28 = smov [#allocation2]   ;;  %s4819_s23 = int_to_ptr.vmem [resolvable:$true] %s2324_s23 }
  0x1f   : > { %2777 = vmatprep.subr.msk.bf16.mxu0 %vm2776_vm4, %v3011_v15  ;;  %vm2792_vm9 = vmpackc.low %vm252_vm3, %vm236_vm2  ;;  %vm266_vm10 = vcmp.eq.s32.totalorder %v3098_v9, %v3106_v11  ;;  %vm282_vm11 = vcmp.eq.s32.totalorder %v3101_v10, %v3106_v11  ;;  %vm268_vm13 = vcmp.eq.s32.totalorder %v3098_v9, %v3111_v12  ;;  %vm284_vm14 = vcmp.eq.s32.totalorder %v3101_v10, %v3111_v12  ;;  %s2946_s27 = scalar_lea.vmem %s4819_s23, 128  ;;  %s2950_s29 = sshll.u32 %s3013_s28, 4  ;;  %s2951_s29 = int_to_ptr.vmem [resolvable:$false] %s2950_s29 }
  0x20   : > { %2793 = vmatprep.subr.msk.bf16.mxu1 %vm2792_vm9, %v3011_v15  ;;  %vm2778_vm12 = vmpackc.low %vm249_vm6, %vm233_vm5  ;;  %vm265_vm0 = vcmp.eq.s32.totalorder %v3098_v9, %v3116_v13  ;;  %vm281_vm1 = vcmp.eq.s32.totalorder %v3101_v10, %v3116_v13  ;;  %vm267_vm3 = vcmp.eq.s32.totalorder %v3098_v9, %v3121_v14  ;;  %vm283_vm4 = vcmp.eq.s32.totalorder %v3101_v10, %v3121_v14  ;;  %p2947_p11 = scmp.ne.s32.totalorder %s4819_s23, %s2946_s27  ;;  %s2952_s30 = scalar_lea.vmem %s2951_s29, 256 }
  0x21   : > { %2779 = vmatpush1.bf16.msk.msra.mxu0 %vm2778_vm12, %v3011_v15  ;;  %vm2794_vm15 = vmpackc.low %vm251_vm8, %vm235_vm7  ;;  %vm298_vm6 = vcmp.eq.s32.totalorder %v3145_v16, %v3106_v11  ;;  %vm314_vm7 = vcmp.eq.s32.totalorder %v3148_v17, %v3106_v11  ;;  %v199_v21 = vsub.s32 7, %v3080_v2  ;;  %vm300_vm9 = vcmp.eq.s32.totalorder %v3145_v16, %v3111_v12  ;;  %p2953_p0 = scmp.lt.s32.totalorder %s4819_s23, %s2951_s29  ;;  %p2954_p1 = scmp.lt.s32.totalorder %s2952_s30, %s2946_s27 }
  0x22   : > { %2795 = vmatpush1.bf16.msk.msra.mxu1 %vm2794_vm15, %v3011_v15  ;;  %vm2780_vm2 = vmpackc.low %vm282_vm11, %vm266_vm10  ;;  %vm316_vm10 = vcmp.eq.s32.totalorder %v3148_v17, %v3111_v12  ;;  %v187_v22 = vsub.s32 4, %v3080_v2  ;;  %v195_v23 = vsub.s32 6, %v3080_v2  ;;  %vm297_vm12 = vcmp.eq.s32.totalorder %v3145_v16, %v3116_v13  ;;  %p2948_p12 = pnand %p2947_p11, %p3067_p5 }
  0x23   : > { %2781 = vmatprep.subr.msk.bf16.mxu0 %vm2780_vm2, %v3011_v15  ;;  %vm2796_vm5 = vmpackc.low %vm284_vm14, %vm268_vm13  ;;  %vm313_vm13 = vcmp.eq.s32.totalorder %v3148_v17, %v3116_v13  ;;  %vm299_vm15 = vcmp.eq.s32.totalorder %v3145_v16, %v3121_v14  ;;  %v3210_v24 = vrot.slane %v3095_v8, %v191_v19  ;;  %vm330_vm2 = vcmp.eq.s32.totalorder %v3166_v18, %v3106_v11  ;;  %p2955_p2 = por %p2954_p1, %p2953_p0 }
  0x24   : > { %2797 = vmatprep.subr.msk.bf16.mxu1 %vm2796_vm5, %v3011_v15  ;;  %vm2782_vm8 = vmpackc.low %vm281_vm1, %vm265_vm0  ;;  %vm315_vm0 = vcmp.eq.s32.totalorder %v3148_v17, %v3121_v14  ;;  %v3220_v25 = vrot.slane %v3095_v8, %v199_v21  ;;  %vm332_vm5 = vcmp.eq.s32.totalorder %v3166_v18, %v3111_v12  ;;  %v3230_v26 = vrot.slane %v3095_v8, %v187_v22  ;;  %p2949_p13 = pneg %p2948_p12 }
  0x25   : > { %2783 = vmatpush1.bf16.msk.msra.mxu0 %vm2782_vm8, %v3011_v15  ;;  %vm2798_vm11 = vmpackc.low %vm283_vm4, %vm267_vm3  ;;  %vm346_vm3 = vcmp.eq.s32.totalorder %v3175_v20, %v3106_v11  ;;  %v3235_v27 = vrot.slane %v3095_v8, %v195_v23  ;;  %vm329_vm8 = vcmp.eq.s32.totalorder %v3166_v18, %v3116_v13  ;;  %v3324_v30 = vrot.slane %v3258_v28, %v171_v5  ;;  %v3939_v11 = vld [vmem:[%s4860_s1 + $0x58] sm:$0xff] }
  0x26   : > { %2799 = vmatpush1.bf16.msk.msra.mxu1 %vm2798_vm11, %v3011_v15  ;;  %vm2784_vm14 = vmpackc.low %vm314_vm7, %vm298_vm6  ;;  %vm348_vm6 = vcmp.eq.s32.totalorder %v3175_v20, %v3111_v12  ;;  %v3329_v31 = vrot.slane %v3258_v28, %v179_v7  ;;  %v3455_v34 = vrot.slane %v3258_v28, %v175_v3  ;;  %v3476_v35 = vrot.slane %v3258_v28, %v183_v4  ;;  %p2956_p3 = pnand %p2955_p2, %p2949_p13 }
  0x27   : > { %2785 = vmatprep.subr.msk.bf16.mxu0 %vm2784_vm14, %v3011_v15  ;;  %vm2800_vm1 = vmpackc.low %vm316_vm10, %vm300_vm9  ;;  %vm345_vm9 = vcmp.eq.s32.totalorder %v3175_v20, %v3116_v13  ;;  %vm4862_vm10 = vcmask 523264   ;;  %vm238_vm14 = vcmp.eq.s32.totalorder %v3080_v2, %v3210_v24  ;;  %v3512_v37 = vrot.slane %v3258_v28, %v191_v19  ;;  %v3960_v13 = vld [vmem:[%s4860_s1 + $0x60] sm:$0xff] }
  0x28   : > { %2801 = vmatprep.subr.msk.bf16.mxu1 %vm2800_vm1, %v3011_v15  ;;  %vm2786_vm4 = vmpackc.low %vm313_vm13, %vm297_vm12  ;;  %vm331_vm12 = vcmp.eq.s32.totalorder %v3166_v18, %v3121_v14  ;;  %vm347_vm13 = vcmp.eq.s32.totalorder %v3175_v20, %v3121_v14  ;;  %vm240_vm1 = vcmp.eq.s32.totalorder %v3080_v2, %v3220_v25  ;;  %v3517_v38 = vrot.slane %v3258_v28, %v199_v21  ;;  %v3971_v14 = vld [vmem:[%s4860_s1 + $0x68] sm:$0xff] }
  0x29   : > { %2787 = vmatpush1.bf16.msk.msra.mxu0 %vm2786_vm4, %v3011_v15  ;;  %vm2802_vm7 = vmpackc.low %vm315_vm0, %vm299_vm15  ;;  %vm254_vm15 = vcmp.eq.s32.totalorder %v3091_v6, %v3210_v24  ;;  %vm239_vm4 = vcmp.eq.s32.totalorder %v3080_v2, %v3235_v27  ;;  %v3532_v39 = vrot.slane %v3258_v28, %v187_v22  ;;  %v3537_v40 = vrot.slane %v3258_v28, %v195_v23 }
  0x2a   : > { %2803 = vmatpush1.bf16.msk.msra.mxu1 %vm2802_vm7, %v3011_v15  ;;  %vm2788_vm11 = vmpackc.low %vm346_vm3, %vm330_vm2  ;;  %vm270_vm2 = vcmp.eq.s32.totalorder %v3098_v9, %v3210_v24  ;;  %vm237_vm7 = vcmp.eq.s32.totalorder %v3080_v2, %v3230_v26  ;;  %vm269_vm3 = vcmp.eq.s32.totalorder %v3098_v9, %v3230_v26  ;;  %v4924_v60 = vmov 0 }
  0x2b   : > { %2789 = vmatprep.subr.msk.bf16.mxu0 %vm2788_vm11, %v3011_v15  ;;  %vm2804_vm0 = vmpackc.low %vm348_vm6, %vm332_vm5  ;;  %vm256_vm6 = vcmp.eq.s32.totalorder %v3091_v6, %v3220_v25  ;;  %vm253_vm11 = vcmp.eq.s32.totalorder %v3091_v6, %v3230_v26  ;;  %v4927_v61 = vmov 0  ;;  %v4931_v62 = vmov 0 }
  0x2c   : > { %2805 = vmatprep.subr.msk.bf16.mxu1 %vm2804_vm0, %v3011_v15  ;;  %vm2790_vm5 = vmpackc.low %vm345_vm9, %vm329_vm8  ;;  %vm255_vm9 = vcmp.eq.s32.totalorder %v3091_v6, %v3235_v27  ;;  %vm304_vm0 = vcmp.eq.s32.totalorder %v3145_v16, %v3220_v25  ;;  %v4935_v0 = vmov 0  ;;  %v4939_v3 = vmov 0 }
  0x2d   : > { %2791 = vmatpush1.bf16.msk.msra.mxu0 %vm2790_vm5, %v3011_v15  ;;  %vm2806_vm8 = vmpackc.low %vm347_vm13, %vm331_vm12  ;;  %vm288_vm5 = vcmp.eq.s32.totalorder %v3101_v10, %v3220_v25  ;;  %vm303_vm13 = vcmp.eq.s32.totalorder %v3145_v16, %v3235_v27  ;;  %v4943_v4 = vmov 0  ;;  %v4948_v5 = vmov 0 }
  0x2e   : > { %2807 = vmatpush1.bf16.msk.msra.mxu1 %vm2806_vm8, %v3011_v15  ;;  %vm2808_vm12 = vmpackc.low %vm254_vm15, %vm238_vm14  ;;  %vm287_vm15 = vcmp.eq.s32.totalorder %v3101_v10, %v3235_v27  ;;  %vm318_vm8 = vcmp.eq.s32.totalorder %v3148_v17, %v3210_v24  ;;  %v4953_v7 = vmov 0  ;;  %v4957_v8 = vmov 0 }
  0x2f   : > { %2809 = vmatprep.subr.msk.bf16.mxu0 %vm2808_vm12, %v3011_v15  ;;  %vm2824_vm14 = vmpackc.low %vm256_vm6, %vm240_vm1  ;;  %vm301_vm6 = vcmp.eq.s32.totalorder %v3145_v16, %v3230_v26  ;;  %vm317_vm12 = vcmp.eq.s32.totalorder %v3148_v17, %v3230_v26  ;;  %v4969_v12 = vmov 0 }
  0x30   : > { %2530 = vmatmul.mubr.msk.f32.vlgmr.msra.gmra.mrb[0].mxu0 %vm4862_vm10, %v3300_v29  ;;  %2825 = vmatprep.subr.msk.bf16.mxu1 %vm2824_vm14, %v3011_v15  ;;  %vm2810_vm1 = vmpackc.low %vm253_vm11, %vm237_vm7  ;;  %vm334_vm11 = vcmp.eq.s32.totalorder %v3166_v18, %v3210_v24  ;;  %vm4871_vm14 = vcmp.eq.s32.totalorder %v3145_v16, %v3210_v24 }
  0x31   : > { %2562 = vmatmul.mubr.msk.f32.vlgmr.msra.gmra.mrb[0].mxu1 %vm4862_vm10, %v3300_v29  ;;  %2811 = vmatpush1.bf16.msk.msra.mxu0 %vm2810_vm1, %v3011_v15  ;;  %vm2826_vm7 = vmpackc.low %vm255_vm9, %vm239_vm4  ;;  %vm4867_vm4 = vcmp.eq.s32.totalorder %v3101_v10, %v3210_v24 }
  0x32   : > { %2827 = vmatpush1.bf16.msk.msra.mxu1 %vm2826_vm7, %v3011_v15  ;;  %736 = vmatprep.mubr.f32.mxu0 %v3010_v1  ;;  %vm2812_vm9 = vmpackc.low %vm4867_vm4, %vm270_vm2  ;;  %vm4868_vm7 = vcmp.eq.s32.totalorder %v3098_v9, %v3220_v25  ;;  %vm338_vm4 = vcmp.eq.s32.totalorder %v3166_v18, %v3455_v34 }
  0x33   : > { %897 = vmatprep.mubr.f32.mxu1 %v3010_v1  ;;  %2813 = vmatprep.subr.msk.bf16.mxu0 %vm2812_vm9, %v3011_v15  ;;  %vm2828_vm2 = vmpackc.low %vm288_vm5, %vm4868_vm7  ;;  %vm4869_vm5 = vcmp.eq.s32.totalorder %v3101_v10, %v3230_v26  ;;  %vm336_vm7 = vcmp.eq.s32.totalorder %v3166_v18, %v3220_v25 }
  0x34   : > { %2531 = vmatmul.mubr.msk.f32.gmra.mrb[2].mxu0 %vm4862_vm10, %v3373_v32  ;;  %2829 = vmatprep.subr.msk.bf16.mxu1 %vm2828_vm2, %v3011_v15  ;;  %vm2814_vm9 = vmpackc.low %vm4869_vm5, %vm269_vm3  ;;  %vm4870_vm3 = vcmp.eq.s32.totalorder %v3098_v9, %v3235_v27  ;;  %vm349_vm5 = vcmp.eq.s32.totalorder %v3175_v20, %v3230_v26 }
  0x35   : > { %2563 = vmatmul.mubr.msk.f32.gmra.mrb[2].mxu1 %vm4862_vm10, %v3373_v32  ;;  %742 = vmatprep.mubr.f32.mxu0 %v3010_v1  ;;  %vm2830_vm2 = vmpackc.low %vm287_vm15, %vm4870_vm3  ;;  %vm351_vm3 = vcmp.eq.s32.totalorder %v3175_v20, %v3235_v27 }
  0x36   : > { %903 = vmatprep.mubr.f32.mxu1 %v3010_v1  ;;  %2815 = vmatpush1.bf16.msk.msra.mxu0 %vm2814_vm9, %v3011_v15  ;;  %vm2816_vm15 = vmpackc.low %vm318_vm8, %vm4871_vm14  ;;  %vm4872_vm8 = vcmp.eq.s32.totalorder %v3148_v17, %v3220_v25  ;;  %vm335_vm9 = vcmp.eq.s32.totalorder %v3166_v18, %v3235_v27 }
  0x37   : > { %2831 = vmatpush1.bf16.msk.msra.mxu1 %vm2830_vm2, %v3011_v15  ;;  %2817 = vmatprep.subr.msk.bf16.mxu0 %vm2816_vm15, %v3011_v15  ;;  %vm2832_vm14 = vmpackc.low %vm4872_vm8, %vm304_vm0  ;;  %vm244_vm8 = vcmp.eq.s32.totalorder %v3080_v2, %v3476_v35 }
  0x38   : > { %2532 = vmatmul.mubr.msk.f32.gmra.mrb[4].mxu0 %vm4862_vm10, %v3430_v33  ;;  %2833 = vmatprep.subr.msk.bf16.mxu1 %vm2832_vm14, %v3011_v15  ;;  %vm2818_vm0 = vmpackc.low %vm317_vm12, %vm301_vm6  ;;  %vm4873_vm6 = vcmp.eq.s32.totalorder %v3148_v17, %v3235_v27  ;;  %vm242_vm14 = vcmp.eq.s32.totalorder %v3080_v2, %v3455_v34 }
  0x39   : > { %2564 = vmatmul.mubr.msk.f32.gmra.mrb[4].mxu1 %vm4862_vm10, %v3430_v33  ;;  %748 = vmatprep.mubr.f32.mxu0 %v3010_v1  ;;  %vm2834_vm12 = vmpackc.low %vm4873_vm6, %vm303_vm13  ;;  %vm4874_vm13 = vcmp.eq.s32.totalorder %v3175_v20, %v3210_v24 }
  0x3a   : > { %909 = vmatprep.mubr.f32.mxu1 %v3010_v1  ;;  %2819 = vmatpush1.bf16.msk.msra.mxu0 %vm2818_vm0, %v3011_v15  ;;  %vm2820_vm6 = vmpackc.low %vm4874_vm13, %vm334_vm11  ;;  %vm4875_vm11 = vcmp.eq.s32.totalorder %v3175_v20, %v3220_v25  ;;  %vm258_vm13 = vcmp.eq.s32.totalorder %v3091_v6, %v3455_v34 }
  0x3b   : > { %2835 = vmatpush1.bf16.msk.msra.mxu1 %vm2834_vm12, %v3011_v15  ;;  %2821 = vmatprep.subr.msk.bf16.mxu0 %vm2820_vm6, %v3011_v15  ;;  %vm2836_vm0 = vmpackc.low %vm4875_vm11, %vm336_vm7  ;;  %vm4876_vm12 = vcmp.eq.s32.totalorder %v3166_v18, %v3230_v26  ;;  %vm260_vm6 = vcmp.eq.s32.totalorder %v3091_v6, %v3476_v35 }
  0x3c   : > { %2533 = vmatmul.mubr.msk.f32.gmra.mrb[6].mxu0 %vm4862_vm10, %v3499_v36  ;;  %2837 = vmatprep.subr.msk.bf16.mxu1 %vm2836_vm0, %v3011_v15  ;;  %vm2822_vm7 = vmpackc.low %vm349_vm5, %vm4876_vm12  ;;  %vm241_vm0 = vcmp.eq.s32.totalorder %v3080_v2, %v3324_v30  ;;  %vm4887_vm12 = vcmp.eq.s32.totalorder %v3098_v9, %v3324_v30 }
  0x3d   : > { %2565 = vmatmul.mubr.msk.f32.gmra.mrb[6].mxu1 %vm4862_vm10, %v3499_v36  ;;  %754 = vmatprep.mubr.f32.mxu0 %v3010_v1  ;;  %vm2838_vm5 = vmpackc.low %vm351_vm3, %vm335_vm9  ;;  %vm243_vm3 = vcmp.eq.s32.totalorder %v3080_v2, %v3329_v31 }
  0x3e   : > { %915 = vmatprep.mubr.f32.mxu1 %v3010_v1  ;;  %2823 = vmatpush1.bf16.msk.msra.mxu0 %vm2822_vm7, %v3011_v15  ;;  %vm2840_vm15 = vmpackc.low %vm258_vm13, %vm242_vm14  ;;  %vm274_vm7 = vcmp.eq.s32.totalorder %v3098_v9, %v3455_v34  ;;  %vm290_vm14 = vcmp.eq.s32.totalorder %v3101_v10, %v3455_v34 }
  0x3f   : > { %2839 = vmatpush1.bf16.msk.msra.mxu1 %vm2838_vm5, %v3011_v15  ;;  %2841 = vmatprep.subr.msk.bf16.mxu0 %vm2840_vm15, %v3011_v15  ;;  %vm2856_vm9 = vmpackc.low %vm260_vm6, %vm244_vm8  ;;  %vm4877_vm15 = vcmp.eq.s32.totalorder %v3091_v6, %v3324_v30  ;;  %vm276_vm8 = vcmp.eq.s32.totalorder %v3098_v9, %v3476_v35  ;;  %vm292_vm6 = vcmp.eq.s32.totalorder %v3101_v10, %v3476_v35 }
  0x40   : > { %2534 = vmatmul.mubr.msk.f32.gmra.mrb[8].mxu0 %vm4862_vm10, %v3574_v41  ;;  %2857 = vmatprep.subr.msk.bf16.mxu1 %vm2856_vm9, %v3011_v15  ;;  %vm3614_vm13 = vmpackc.low %vm4877_vm15, %vm241_vm0  ;;  %vm4880_vm5 = vcmp.eq.s32.totalorder %v3091_v6, %v3329_v31  ;;  %vm308_vm15 = vcmp.eq.s32.totalorder %v3145_v16, %v3476_v35 }
  0x41   : > { %2566 = vmatmul.mubr.msk.f32.gmra.mrb[8].mxu1 %vm4862_vm10, %v3574_v41  ;;  %760 = vmatprep.mubr.f32.mxu0 %v3010_v1  ;;  %vm3633_vm0 = vmpackc.low %vm4880_vm5, %vm243_vm3  ;;  %vm324_vm3 = vcmp.eq.s32.totalorder %v3148_v17, %v3476_v35 }
  0x42   : > { %921 = vmatprep.mubr.f32.mxu1 %v3010_v1  ;;  %vm3647_vm11 = vmpackc.low %vm290_vm14, %vm274_vm7  ;;  %vm306_vm7 = vcmp.eq.s32.totalorder %v3145_v16, %v3455_v34  ;;  %vm322_vm14 = vcmp.eq.s32.totalorder %v3148_v17, %v3455_v34 }
  0x43   : > { %vm3662_vm9 = vmpackc.low %vm292_vm6, %vm276_vm8  ;;  %vm4888_vm8 = vcmp.eq.s32.totalorder %v3101_v10, %v3324_v30 }
  0x44   : > { %2535 = vmatmul.mubr.msk.f32.gmra.mrb[10].mxu0 %vm4862_vm10, %v3628_v43  ;;  %vm3680_vm6 = vmpackc.low %vm4888_vm8, %vm4887_vm12  ;;  %vm4891_vm12 = vcmp.eq.s32.totalorder %v3098_v9, %v3329_v31  ;;  %vm4892_vm8 = vcmp.eq.s32.totalorder %v3101_v10, %v3329_v31 }
  0x45   : > { %2567 = vmatmul.mubr.msk.f32.gmra.mrb[10].mxu1 %vm4862_vm10, %v3628_v43  ;;  %766 = vmatprep.mubr.f32.mxu0 %v3010_v1  ;;  %vm3702_vm5 = vmpackc.low %vm4892_vm8, %vm4891_vm12  ;;  %vm354_vm10 = vcmp.eq.s32.totalorder %v3175_v20, %v3455_v34  ;;  %vm4899_vm12 = vcmask 523264   ;;  %vm4900_vm8 = vcmp.eq.s32.totalorder %v3145_v16, %v3324_v30 }
  0x46   : > { %v4894_v49 = vsel %vm3702_vm5, 4294967295, %v4893_v49  ;;  %927 = vmatprep.mubr.f32.mxu1 %v3010_v1  ;;  %vm3707_vm2 = vmpackc.low %vm322_vm14, %vm306_vm7  ;;  %vm4901_vm7 = vcmp.eq.s32.totalorder %v3148_v17, %v3324_v30  ;;  %vm4913_vm5 = vcmask 523264  }
  0x47   : > { %v4896_v50 = vsel %vm3707_vm2, 4294967295, %v4895_v50  ;;  %vm3711_vm1 = vmpackc.low %vm324_vm3, %vm308_vm15  ;;  %vm340_vm15 = vcmp.eq.s32.totalorder %v3166_v18, %v3476_v35  ;;  %vm356_vm3 = vcmp.eq.s32.totalorder %v3175_v20, %v3476_v35  ;;  %vm246_vm2 = vcmp.eq.s32.totalorder %v3080_v2, %v3512_v37 }
  0x48   : > { %v4898_v51 = vsel %vm3711_vm1, 4294967295, %v4897_v51  ;;  %2536 = vmatmul.mubr.msk.f32.gmra.mrb[12].mxu0 %vm4899_vm12, %v3694_v48  ;;  %vm3727_vm14 = vmpackc.low %vm4901_vm7, %vm4900_vm8  ;;  %vm4906_vm8 = vcmp.eq.s32.totalorder %v3148_v17, %v3329_v31 }
  0x49   : > { %v4903_v52 = vsel %vm3727_vm14, 4294967295, %v4902_v52  ;;  %vm4904_vm1 = vmmov %vm4899_vm12  ;;  %772 = vmatprep.mubr.f32.mxu0 %v3010_v1  ;;  %vm4905_vm12 = vcmp.eq.s32.totalorder %v3145_v16, %v3329_v31 }
  0x4a   : > { %2568 = vmatmul.mubr.msk.f32.gmra.mrb[12].mxu1 %vm4904_vm1, %v3694_v48  ;;  %vm3749_vm7 = vmpackc.low %vm4906_vm8, %vm4905_vm12  ;;  %vm4914_vm12 = vcmp.eq.s32.totalorder %v3166_v18, %v3324_v30  ;;  %vm4915_vm8 = vcmp.eq.s32.totalorder %v3175_v20, %v3324_v30 }
  0x4b   : > { %933 = vmatprep.mubr.f32.mxu1 %v3010_v1  ;;  %vm3754_vm1 = vmpackc.low %vm354_vm10, %vm338_vm4  ;;  %vm248_vm4 = vcmp.eq.s32.totalorder %v3080_v2, %v3517_v38 }
  0x4c   : > { %v4910_v55 = vsel %vm3754_vm1, 4294967295, %v4909_v55  ;;  %vm3758_vm14 = vmpackc.low %vm356_vm3, %vm340_vm15  ;;  %2537 = vmatmul.mubr.msk.f32.gmra.mrb[14].mxu0 %vm4913_vm5, %v3741_v53  ;;  %vm4920_vm3 = vcmp.eq.s32.totalorder %v3175_v20, %v3329_v31  ;;  %vm4930_vm1 = vcmp.eq.s32.totalorder %v3091_v6, %v3532_v39 }
  0x4d   : > { %v4912_v56 = vsel %vm3758_vm14, 4294967295, %v4911_v56  ;;  %vm3772_vm10 = vmpackc.low %vm4915_vm8, %vm4914_vm12  ;;  %778 = vmatprep.mubr.f32.mxu0 %v3010_v1  ;;  %vm245_vm8 = vcmp.eq.s32.totalorder %v3080_v2, %v3532_v39  ;;  %vm247_vm14 = vcmp.eq.s32.totalorder %v3080_v2, %v3537_v40 }
  0x4e   : > { %v4917_v57 = vsel %vm3772_vm10, 4294967295, %v4916_v57  ;;  %vm4918_vm15 = vmmov %vm4913_vm5  ;;  %vm4919_vm5 = vcmp.eq.s32.totalorder %v3166_v18, %v3329_v31 }
  0x4f   : > { %2569 = vmatmul.mubr.msk.f32.gmra.mrb[14].mxu1 %vm4918_vm15, %v3741_v53  ;;  %vm3792_vm12 = vmpackc.low %vm4920_vm3, %vm4919_vm5  ;;  %vm4923_vm15 = vcmp.eq.s32.totalorder %v3091_v6, %v3512_v37  ;;  %vm4926_vm5 = vcmp.eq.s32.totalorder %v3091_v6, %v3517_v38 }
  0x50   : > { %v4922_v59 = vsel %vm3792_vm12, 4294967295, %v4921_v59  ;;  %939 = vmatprep.mubr.f32.mxu1 %v3010_v1  ;;  %vm3802_vm10 = vmpackc.low %vm4923_vm15, %vm246_vm2  ;;  %vm4929_vm12 = vcmask 523264  }
  0x51   : > { %v4925_v60 = vsel %vm3802_vm10, 4294967295, %v4924_v60  ;;  %vm3811_vm3 = vmpackc.low %vm4926_vm5, %vm248_vm4  ;;  %2538 = vmatmul.mubr.msk.f32.gmra.mrb[16].mxu0 %vm4929_vm12, %v3784_v58  ;;  %vm4934_vm4 = vcmp.eq.s32.totalorder %v3091_v6, %v3537_v40  ;;  %vm325_vm5 = vcmp.eq.s32.totalorder %v3148_v17, %v3532_v39  ;;  %v3894_v6 = vld [vmem:[%s4860_s1 + $0x50] sm:$0xff] }
  0x52   : > { %v4928_v61 = vsel %vm3811_vm3, 4294967295, %v4927_v61  ;;  %vm3820_vm2 = vmpackc.low %vm4930_vm1, %vm245_vm8  ;;  %784 = vmatprep.mubr.f32.mxu0 %v3010_v1  ;;  %vm328_vm1 = vcmp.eq.s32.totalorder %v3148_v17, %v3517_v38  ;;  %vm4945_vm8 = vcmask 523264   ;;  %vm4946_vm3 = vcmp.eq.s32.totalorder %v3098_v9, %v3532_v39 }
  0x53   : > { %v4932_v62 = vsel %vm3820_vm2, 4294967295, %v4931_v62  ;;  %vm4933_vm15 = vmmov %vm4929_vm12  ;;  %vm4941_vm2 = vcmp.eq.s32.totalorder %v3098_v9, %v3517_v38 }
  0x54   : > { %2570 = vmatmul.mubr.msk.f32.gmra.mrb[16].mxu1 %vm4933_vm15, %v3784_v58  ;;  %vm3835_vm12 = vmpackc.low %vm4934_vm4, %vm247_vm14  ;;  %vm4937_vm15 = vcmp.eq.s32.totalorder %v3098_v9, %v3512_v37  ;;  %vm4938_vm14 = vcmp.eq.s32.totalorder %v3101_v10, %v3512_v37 }
  0x55   : > { %v4936_v0 = vsel %vm3835_vm12, 4294967295, %v4935_v0  ;;  %945 = vmatprep.mubr.f32.mxu1 %v3010_v1  ;;  %vm3852_vm4 = vmpackc.low %vm4938_vm14, %vm4937_vm15  ;;  %vm4942_vm15 = vcmp.eq.s32.totalorder %v3101_v10, %v3517_v38  ;;  %2539 = vmatmul.mubr.msk.f32.gmra.mrb[18].mxu0 %vm4945_vm8, %v3830_v63  ;;  %vm4947_vm12 = vcmp.eq.s32.totalorder %v3101_v10, %v3532_v39 }
  0x56   : > { %v4940_v3 = vsel %vm3852_vm4, 4294967295, %v4939_v3  ;;  %vm3870_vm14 = vmpackc.low %vm4942_vm15, %vm4941_vm2  ;;  %790 = vmatprep.mubr.f32.mxu0 %v3010_v1  ;;  %vm4952_vm15 = vcmp.eq.s32.totalorder %v3101_v10, %v3537_v40  ;;  %v4964_v10 = vmov 0 }
  0x57   : > { %v4944_v4 = vsel %vm3870_vm14, 4294967295, %v4943_v4  ;;  %vm3884_vm10 = vmpackc.low %vm4947_vm12, %vm4946_vm3  ;;  %vm4955_vm12 = vcmp.eq.s32.totalorder %v3145_v16, %v3512_v37 }
  0x58   : > { %v4949_v5 = vsel %vm3884_vm10, 4294967295, %v4948_v5  ;;  %vm4950_vm2 = vmmov %vm4945_vm8  ;;  %vm4951_vm8 = vcmp.eq.s32.totalorder %v3098_v9, %v3537_v40  ;;  %vm4959_vm10 = vcmp.eq.s32.totalorder %v3145_v16, %v3517_v38  ;;  %v4960_v9 = vmov 0 }
  0x59   : > { %2571 = vmatmul.mubr.msk.f32.gmra.mrb[18].mxu1 %vm4950_vm2, %v3830_v63  ;;  %vm3902_vm3 = vmpackc.low %vm4952_vm15, %vm4951_vm8  ;;  %vm4956_vm2 = vcmp.eq.s32.totalorder %v3148_v17, %v3512_v37  ;;  %vm4962_vm8 = vcmask 523264   ;;  %vm4963_vm15 = vcmp.eq.s32.totalorder %v3145_v16, %v3532_v39 }
  0x5a   : > { %v4954_v7 = vsel %vm3902_vm3, 4294967295, %v4953_v7  ;;  %951 = vmatprep.mubr.f32.mxu1 %v3010_v1  ;;  %vm3913_vm4 = vmpackc.low %vm4956_vm2, %vm4955_vm12  ;;  %2540 = vmatmul.mubr.msk.f32.gmra.mrb[20].mxu0 %vm4962_vm8, %v3894_v6 }
  0x5b   : > { %v4958_v8 = vsel %vm3913_vm4, 4294967295, %v4957_v8  ;;  %vm3920_vm14 = vmpackc.low %vm328_vm1, %vm4959_vm10  ;;  %796 = vmatprep.mubr.f32.mxu0 %v3010_v1  ;;  %vm4967_vm10 = vcmp.eq.s32.totalorder %v3145_v16, %v3537_v40  ;;  %vm4968_vm1 = vcmp.eq.s32.totalorder %v3148_v17, %v3537_v40  ;;  %v4975_v16 = vmov 0 }
  0x5c   : > { %v4961_v9 = vsel %vm3920_vm14, 4294967295, %v4960_v9  ;;  %vm3929_vm3 = vmpackc.low %vm325_vm5, %vm4963_vm15 }
  0x5d   : > { %v4965_v10 = vsel %vm3929_vm3, 4294967295, %v4964_v10  ;;  %vm4966_vm12 = vmmov %vm4962_vm8  ;;  %vm343_vm3 = vcmp.eq.s32.totalorder %v3166_v18, %v3537_v40 }
  0x5e   : > { %2572 = vmatmul.mubr.msk.f32.gmra.mrb[20].mxu1 %vm4966_vm12, %v3894_v6  ;;  %vm3947_vm5 = vmpackc.low %vm4968_vm1, %vm4967_vm10  ;;  %vm342_vm10 = vcmp.eq.s32.totalorder %v3166_v18, %v3512_v37  ;;  %vm358_vm1 = vcmp.eq.s32.totalorder %v3175_v20, %v3512_v37 }
  0x5f   : > { %v4970_v12 = vsel %vm3947_vm5, 4294967295, %v4969_v12  ;;  %957 = vmatprep.mubr.f32.mxu1 %v3010_v1  ;;  %vm4971_vm2 = vmmov %vm4962_vm8  ;;  %vm357_vm5 = vcmp.eq.s32.totalorder %v3175_v20, %v3532_v39 }
  0x60   : > { %2541 = vmatmul.mubr.msk.f32.gmra.mrb[22].mxu0 %vm4971_vm2, %v3939_v11  ;;  %vm4972_vm8 = vmmov %vm4971_vm2 }
  0x61   : > { %802 = vmatprep.mubr.f32.mxu0 %v3010_v1  ;;  %vm4973_vm15 = vmmov %vm4971_vm2 }
  0x62   : > { %2573 = vmatmul.mubr.msk.f32.gmra.mrb[22].mxu1 %vm4972_vm8, %v3939_v11  ;;  %vm4974_vm12 = vmmov %vm4971_vm2  ;;  %vm344_vm2 = vcmp.eq.s32.totalorder %v3166_v18, %v3517_v38 }
  0x63   : > { %963 = vmatprep.mubr.f32.mxu1 %v3010_v1  ;;  %vm3980_vm8 = vmpackc.low %vm358_vm1, %vm342_vm10  ;;  %vm359_vm10 = vcmp.eq.s32.totalorder %v3175_v20, %v3537_v40  ;;  %vm4979_vm1 = vcmask 523264  }
  0x64   : > { %2542 = vmatmul.mubr.msk.f32.gmra.mrb[24].mxu0 %vm4973_vm15, %v3960_v13  ;;  %v4976_v16 = vsel %vm3980_vm8, 4294967295, %v4975_v16  ;;  %vm360_vm15 = vcmp.eq.s32.totalorder %v3175_v20, %v3517_v38  ;;  %vm4982_vm4 = vmmov %vm4979_vm1  ;;  %v4025_v20 = vld [vmem:[%s4860_s1 + $0x78] sm:$0xff] }
  0x65   : > { %808 = vmatprep.mubr.f32.mxu0 %v3010_v1  ;;  %vm3992_vm14 = vmpackc.low %vm360_vm15, %vm344_vm2 }
  0x66   : > { %2574 = vmatmul.mubr.msk.f32.gmra.mrb[24].mxu1 %vm4974_vm12, %v3960_v13  ;;  %vm341_vm12 = vcmp.eq.s32.totalorder %v3166_v18, %v3532_v39  ;;  %v4010_v18 = vld [vmem:[%s4860_s1 + $0x70] sm:$0xff]  ;;  %vm4012_vm2 = vmpackc.low %vm359_vm10, %vm343_vm3 }
  0x67   : > { %969 = vmatprep.mubr.f32.mxu1 %v3010_v1  ;;  %vm4000_vm8 = vmpackc.low %vm357_vm5, %vm341_vm12 }
  0x68   : > { %2543 = vmatmul.mubr.msk.f32.gmra.mrb[26].mxu0 %vm4979_vm1, %v3971_v14  ;;  %vm4985_vm5 = vmmov %vm4979_vm1 }
  0x69   : > { %814 = vmatprep.mubr.f32.mxu0 %v3010_v1  ;;  %vm4986_vm15 = vmmov %vm4979_vm1 }
  0x6a   : > { %2575 = vmatmul.mubr.msk.f32.gmra.mrb[26].mxu1 %vm4982_vm4, %v3971_v14  ;;  %vm4987_vm4 = vmmov %vm4979_vm1 }
  0x6b   : > { %975 = vmatprep.mubr.f32.mxu1 %v3010_v1  ;;  %vm4988_vm3 = vmmov %vm4979_vm1 }
  0x6c   : > { %2544 = vmatmul.mubr.msk.f32.gmra.mrb[28].mxu0 %vm4985_vm5, %v4010_v18  ;;  %vm4989_vm12 = vmmov %vm4979_vm1  ;;  %vm4995_vm5 = vnez %v4898_v51 }
  0x6d   : > { %820 = vmatprep.mubr.f32.mxu0 %v3010_v1  ;;  %vm4990_vm10 = vmmov %vm4979_vm1 }
  0x6e   : > { %2576 = vmatmul.mubr.msk.f32.gmra.mrb[28].mxu1 %vm4986_vm15, %v4010_v18  ;;  %vm4996_vm15 = vmmov %vm4979_vm1 }
  0x6f   : > { %981 = vmatprep.mubr.f32.mxu1 %v3010_v1 }
  0x70   : > { %2545 = vmatmul.mubr.msk.f32.gmra.mrb[30].mxu0 %vm4987_vm4, %v4025_v20  ;;  %vm4998_vm4 = vnez %v4910_v55 }
  0x71   : > { %1052 = vmatprep.mubr.f32.mxu0 %v3010_v1 }
  0x72   : > { %2577 = vmatmul.mubr.msk.f32.gmra.mrb[30].mxu1 %vm4988_vm3, %v4025_v20  ;;  %vm4999_vm3 = vmmov %vm4979_vm1 }
  0x73   : > { %1213 = vmatprep.mubr.f32.mxu1 %v3010_v1 }
  0x74   : > { %2594 = vmatmul.mubr.msk.f32.vlgmr.msra.gmra.mrb[32].mxu0 %vm4989_vm12, %v3300_v29  ;;  %vm5000_vm12 = vnez %v4912_v56 }
  0x75   : > { %2843 = vmatpush1.bf16.msk.msra.mxu0 %vm3614_vm13, %v3011_v15  ;;  %1058 = vmatprep.mubr.f32.mxu0 %v3010_v1  ;;  %vm4991_vm13 = vmmov %vm4979_vm1 }
  0x76   : > { %2626 = vmatmul.mubr.msk.f32.vlgmr.msra.gmra.mrb[32].mxu1 %vm4990_vm10, %v3300_v29  ;;  %2845 = vmatprep.subr.msk.bf16.mxu0 %vm3647_vm11, %v3011_v15  ;;  %vm4992_vm11 = vnez %v4894_v49  ;;  %vm5001_vm10 = vmmov %vm4979_vm1 }
  0x77   : > { %2859 = vmatpush1.bf16.msk.msra.mxu1 %vm3633_vm0, %v3011_v15  ;;  %1219 = vmatprep.mubr.f32.mxu1 %v3010_v1  ;;  %vm4993_vm0 = vnez %v4896_v50 }
  0x78   : > { %2595 = vmatmul.mubr.msk.f32.gmra.mrb[34].mxu0 %vm4979_vm1, %v3373_v32  ;;  %2861 = vmatprep.subr.msk.bf16.mxu1 %vm3662_vm9, %v3011_v15  ;;  %vm4994_vm9 = vmmov %vm4979_vm1  ;;  %vm5003_vm1 = vnez %v4922_v59 }
  0x79   : > { %1064 = vmatprep.mubr.f32.mxu0 %v3010_v1  ;;  %2847 = vmatpush1.bf16.msk.msra.mxu0 %vm3680_vm6, %v3011_v15  ;;  %vm4997_vm6 = vnez %v4903_v52 }
  0x7a   : > { %2627 = vmatmul.mubr.msk.f32.gmra.mrb[34].mxu1 %vm4991_vm13, %v3373_v32  ;;  %2849 = vmatprep.subr.msk.bf16.mxu0 %vm4993_vm0, %v3011_v15  ;;  %vm5004_vm13 = vnez %v4925_v60  ;;  %vm5006_vm0 = vnez %v4928_v61 }
  0x7b   : > { %1225 = vmatprep.mubr.f32.mxu1 %v3010_v1  ;;  %2863 = vmatpush1.bf16.msk.msra.mxu1 %vm4992_vm11, %v3011_v15  ;;  %vm5005_vm11 = vmmov %vm4999_vm3 }
  0x7c   : > { %2596 = vmatmul.mubr.msk.f32.gmra.mrb[36].mxu0 %vm4994_vm9, %v3430_v33  ;;  %2865 = vmatprep.subr.msk.bf16.mxu1 %vm4995_vm5, %v3011_v15  ;;  %vm5007_vm9 = vmmov %vm4999_vm3 }
  0x7d   : > { %1070 = vmatprep.mubr.f32.mxu0 %v3010_v1  ;;  %2851 = vmatpush1.bf16.msk.msra.mxu0 %vm4997_vm6, %v3011_v15  ;;  %vm5008_vm5 = vmmov %vm4999_vm3 }
  0x7e   : > { %2628 = vmatmul.mubr.msk.f32.gmra.mrb[36].mxu1 %vm4996_vm15, %v3430_v33  ;;  %2853 = vmatprep.subr.msk.bf16.mxu0 %vm4998_vm4, %v3011_v15  ;;  %vm5009_vm15 = vmmov %vm4999_vm3 }
  0x7f   : > { %1231 = vmatprep.mubr.f32.mxu1 %v3010_v1  ;;  %2867 = vmatpush1.bf16.msk.msra.mxu1 %vm3749_vm7, %v3011_v15  ;;  %vm5002_vm7 = vnez %v4917_v57  ;;  %vm5010_vm6 = vmmov %vm4999_vm3 }
  0x80   : > { %2597 = vmatmul.mubr.msk.f32.gmra.mrb[38].mxu0 %vm4999_vm3, %v3499_v36  ;;  %2869 = vmatprep.subr.msk.bf16.mxu1 %vm5000_vm12, %v3011_v15  ;;  %vm5011_vm4 = vmmov %vm4999_vm3 }
  0x81   : > { %1076 = vmatprep.mubr.f32.mxu0 %v3010_v1  ;;  %2855 = vmatpush1.bf16.msk.msra.mxu0 %vm5002_vm7, %v3011_v15  ;;  %vm5012_vm12 = vmmov %vm4999_vm3 }
  0x82   : > { %2629 = vmatmul.mubr.msk.f32.gmra.mrb[38].mxu1 %vm5001_vm10, %v3499_v36  ;;  %2873 = vmatprep.subr.msk.bf16.mxu0 %vm5004_vm13, %v3011_v15  ;;  %vm5013_vm10 = vmmov %vm4999_vm3 }
  0x83   : > { %1237 = vmatprep.mubr.f32.mxu1 %v3010_v1  ;;  %2871 = vmatpush1.bf16.msk.msra.mxu1 %vm5003_vm1, %v3011_v15  ;;  %vm5014_vm7 = vmmov %vm4999_vm3 }
  0x84   : > { %2598 = vmatmul.mubr.msk.f32.gmra.mrb[40].mxu0 %vm5005_vm11, %v3574_v41  ;;  %2889 = vmatprep.subr.msk.bf16.mxu1 %vm5006_vm0, %v3011_v15  ;;  %vm5015_vm1 = vmmov %vm4999_vm3 }
  0x85   : > { %1082 = vmatprep.mubr.f32.mxu0 %v3010_v1  ;;  %vm5016_vm13 = vmmov %vm5015_vm1 }
  0x86   : > { %2630 = vmatmul.mubr.msk.f32.gmra.mrb[40].mxu1 %vm5007_vm9, %v3574_v41  ;;  %vm5017_vm11 = vmmov %vm5015_vm1 }
  0x87   : > { %1243 = vmatprep.mubr.f32.mxu1 %v3010_v1  ;;  %vm5018_vm0 = vmmov %vm5015_vm1 }
  0x88   : > { %2599 = vmatmul.mubr.msk.f32.gmra.mrb[42].mxu0 %vm5008_vm5, %v3628_v43  ;;  %vm5019_vm9 = vmmov %vm5018_vm0 }
  0x89   : > { %1088 = vmatprep.mubr.f32.mxu0 %v3010_v1  ;;  %vm5020_vm5 = vmmov %vm5018_vm0 }
  0x8a   : > { %2631 = vmatmul.mubr.msk.f32.gmra.mrb[42].mxu1 %vm5009_vm15, %v3628_v43  ;;  %vm5021_vm15 = vmmov %vm5018_vm0 }
  0x8b   : > { %1249 = vmatprep.mubr.f32.mxu1 %v3010_v1 }
  0x8c   : > { %2600 = vmatmul.mubr.msk.f32.gmra.mrb[44].mxu0 %vm5010_vm6, %v3694_v48  ;;  %vm5022_vm6 = vmmov %vm5018_vm0 }
  0x8d   : > { %1094 = vmatprep.mubr.f32.mxu0 %v3010_v1 }
  0x8e   : > { %2632 = vmatmul.mubr.msk.f32.gmra.mrb[44].mxu1 %vm5011_vm4, %v3694_v48  ;;  %vm5023_vm4 = vmmov %vm5018_vm0 }
  0x8f   : > { %1255 = vmatprep.mubr.f32.mxu1 %v3010_v1 }
  0x90   : > { %2601 = vmatmul.mubr.msk.f32.gmra.mrb[46].mxu0 %vm4999_vm3, %v3741_v53  ;;  %vm5024_vm3 = vmmov %vm5018_vm0 }
  0x91   : > { %1100 = vmatprep.mubr.f32.mxu0 %v3010_v1 }
  0x92   : > { %2633 = vmatmul.mubr.msk.f32.gmra.mrb[46].mxu1 %vm5012_vm12, %v3741_v53  ;;  %vm5025_vm12 = vmmov %vm5018_vm0 }
  0x93   : > { %1261 = vmatprep.mubr.f32.mxu1 %v3010_v1 }
  0x94   : > { %2602 = vmatmul.mubr.msk.f32.gmra.mrb[48].mxu0 %vm5013_vm10, %v3784_v58  ;;  %vm5026_vm10 = vmmov %vm5018_vm0 }
  0x95   : > { %1106 = vmatprep.mubr.f32.mxu0 %v3010_v1 }
  0x96   : > { %2634 = vmatmul.mubr.msk.f32.gmra.mrb[48].mxu1 %vm5014_vm7, %v3784_v58  ;;  %vm5027_vm7 = vmmov %vm5018_vm0 }
  0x97   : > { %1267 = vmatprep.mubr.f32.mxu1 %v3010_v1 }
  0x98   : > { %2603 = vmatmul.mubr.msk.f32.gmra.mrb[50].mxu0 %vm5015_vm1, %v3830_v63  ;;  %vm5028_vm1 = vmmov %vm5018_vm0 }
  0x99   : > { %1112 = vmatprep.mubr.f32.mxu0 %v3010_v1 }
  0x9a   : > { %2635 = vmatmul.mubr.msk.f32.gmra.mrb[50].mxu1 %vm5016_vm13, %v3830_v63  ;;  %vm5029_vm13 = vmmov %vm5018_vm0 }
  0x9b   : > { %1273 = vmatprep.mubr.f32.mxu1 %v3010_v1 }
  0x9c   : > { %2604 = vmatmul.mubr.msk.f32.gmra.mrb[52].mxu0 %vm5017_vm11, %v3894_v6  ;;  %vm5030_vm11 = vmmov %vm5018_vm0 }
  0x9d   : > { %1118 = vmatprep.mubr.f32.mxu0 %v3010_v1 }
  0x9e   : > { %2636 = vmatmul.mubr.msk.f32.gmra.mrb[52].mxu1 %vm5018_vm0, %v3894_v6  ;;  %vm5031_vm0 = vnez %v4932_v62 }
  0x9f   : > { %1279 = vmatprep.mubr.f32.mxu1 %v3010_v1 }
  0xa0   : > { %2605 = vmatmul.mubr.msk.f32.gmra.mrb[54].mxu0 %vm5019_vm9, %v3939_v11  ;;  %vm5032_vm9 = vnez %v4936_v0 }
  0xa1   : > { %1124 = vmatprep.mubr.f32.mxu0 %v3010_v1 }
  0xa2   : > { %2637 = vmatmul.mubr.msk.f32.gmra.mrb[54].mxu1 %vm5020_vm5, %v3939_v11  ;;  %vm5033_vm5 = vnez %v4940_v3 }
  0xa3   : > { %1285 = vmatprep.mubr.f32.mxu1 %v3010_v1 }
  0xa4   : > { %2606 = vmatmul.mubr.msk.f32.gmra.mrb[56].mxu0 %vm5021_vm15, %v3960_v13  ;;  %vm5034_vm15 = vmmov %vm5028_vm1 }
  0xa5   : > { %1130 = vmatprep.mubr.f32.mxu0 %v3010_v1 }
  0xa6   : > { %2638 = vmatmul.mubr.msk.f32.gmra.mrb[56].mxu1 %vm5022_vm6, %v3960_v13  ;;  %vm5035_vm6 = vnez %v4944_v4 }
  0xa7   : > { %1291 = vmatprep.mubr.f32.mxu1 %v3010_v1 }
  0xa8   : > { %2607 = vmatmul.mubr.msk.f32.gmra.mrb[58].mxu0 %vm5023_vm4, %v3971_v14  ;;  %vm5036_vm4 = vmmov %vm5028_vm1 }
  0xa9   : > { %1136 = vmatprep.mubr.f32.mxu0 %v3010_v1 }
  0xaa   : > { %2639 = vmatmul.mubr.msk.f32.gmra.mrb[58].mxu1 %vm5024_vm3, %v3971_v14  ;;  %vm5037_vm3 = vnez %v4949_v5 }
  0xab   : > { %1297 = vmatprep.mubr.f32.mxu1 %v3010_v1 }
  0xac   : > { %2608 = vmatmul.mubr.msk.f32.gmra.mrb[60].mxu0 %vm5025_vm12, %v4010_v18  ;;  %vm5038_vm12 = vnez %v4954_v7 }
  0xad   : > { %1142 = vmatprep.mubr.f32.mxu0 %v3010_v1 }
  0xae   : > { %2640 = vmatmul.mubr.msk.f32.gmra.mrb[60].mxu1 %vm5026_vm10, %v4010_v18  ;;  %vm5039_vm10 = vnez %v4958_v8 }
  0xaf   : > { %1303 = vmatprep.mubr.f32.mxu1 %v3010_v1 }
  0xb0   : > { %2609 = vmatmul.mubr.msk.f32.gmra.mrb[62].mxu0 %vm5027_vm7, %v4025_v20  ;;  %vm5040_vm7 = vmmov %vm5028_vm1 }
  0xb1   : > { %1374 = vmatprep.mubr.f32.mxu0 %v3010_v1 }
  0xb2   : > { %2641 = vmatmul.mubr.msk.f32.gmra.mrb[62].mxu1 %vm5028_vm1, %v4025_v20  ;;  %vm5041_vm1 = vnez %v4961_v9 }
  0xb3   : > { %1535 = vmatprep.mubr.f32.mxu1 %v3010_v1 }
  0xb4   : > { %2658 = vmatmul.mubr.msk.f32.vlgmr.msra.gmra.mrb[64].mxu0 %vm5029_vm13, %v3300_v29  ;;  %vm5042_vm13 = vmmov %vm5036_vm4 }
  0xb5   : > { %2875 = vmatpush1.bf16.msk.msra.mxu0 %vm5031_vm0, %v3011_v15  ;;  %1380 = vmatprep.mubr.f32.mxu0 %v3010_v1  ;;  %vm5044_vm0 = vnez %v4970_v12 }
  0xb6   : > { %2690 = vmatmul.mubr.msk.f32.vlgmr.msra.gmra.mrb[64].mxu1 %vm5030_vm11, %v3300_v29  ;;  %2877 = vmatprep.subr.msk.bf16.mxu0 %vm5033_vm5, %v3011_v15  ;;  %vm5043_vm11 = vnez %v4965_v10  ;;  %vm5046_vm5 = vmmov %vm5036_vm4 }
  0xb7   : > { %2891 = vmatpush1.bf16.msk.msra.mxu1 %vm5032_vm9, %v3011_v15  ;;  %1541 = vmatprep.mubr.f32.mxu1 %v3010_v1  ;;  %vm5045_vm9 = vnez %v4976_v16 }
  0xb8   : > { %2659 = vmatmul.mubr.msk.f32.gmra.mrb[66].mxu0 %vm5034_vm15, %v3373_v32  ;;  %2893 = vmatprep.subr.msk.bf16.mxu1 %vm5035_vm6, %v3011_v15  ;;  %vm5047_vm15 = vmmov %vm5036_vm4 }
  0xb9   : > { %1386 = vmatprep.mubr.f32.mxu0 %v3010_v1  ;;  %2879 = vmatpush1.bf16.msk.msra.mxu0 %vm5037_vm3, %v3011_v15  ;;  %vm5048_vm6 = vmmov %vm5036_vm4 }
  0xba   : > { %2691 = vmatmul.mubr.msk.f32.gmra.mrb[66].mxu1 %vm5036_vm4, %v3373_v32  ;;  %2881 = vmatprep.subr.msk.bf16.mxu0 %vm5039_vm10, %v3011_v15  ;;  %vm5050_vm3 = vmmov %vm5036_vm4 }
  0xbb   : > { %1547 = vmatprep.mubr.f32.mxu1 %v3010_v1  ;;  %2895 = vmatpush1.bf16.msk.msra.mxu1 %vm5038_vm12, %v3011_v15 }
  0xbc   : > { %2660 = vmatmul.mubr.msk.f32.gmra.mrb[68].mxu0 %vm5040_vm7, %v3430_v33  ;;  %2897 = vmatprep.subr.msk.bf16.mxu1 %vm5041_vm1, %v3011_v15 }
  0xbd   : > { %1392 = vmatprep.mubr.f32.mxu0 %v3010_v1  ;;  %2883 = vmatpush1.bf16.msk.msra.mxu0 %vm5043_vm11, %v3011_v15 }
  0xbe   : > { %2692 = vmatmul.mubr.msk.f32.gmra.mrb[68].mxu1 %vm5042_vm13, %v3430_v33  ;;  %2885 = vmatprep.subr.msk.bf16.mxu0 %vm5045_vm9, %v3011_v15 }
  0xbf   : > { %1553 = vmatprep.mubr.f32.mxu1 %v3010_v1  ;;  %2899 = vmatpush1.bf16.msk.msra.mxu1 %vm5044_vm0, %v3011_v15 }
  0xc0   : > { %2661 = vmatmul.mubr.msk.f32.gmra.mrb[70].mxu0 %vm5046_vm5, %v3499_v36  ;;  %2901 = vmatprep.subr.msk.bf16.mxu1 %vm3992_vm14, %v3011_v15  ;;  %vm5049_vm14 = vmmov %vm5036_vm4 }
  0xc1   : > { %1398 = vmatprep.mubr.f32.mxu0 %v3010_v1  ;;  %2887 = vmatpush1.bf16.msk.msra.mxu0 %vm4000_vm8, %v3011_v15  ;;  %vm5051_vm8 = vmmov %vm5050_vm3 }
  0xc2   : > { %2693 = vmatmul.mubr.msk.f32.gmra.mrb[70].mxu1 %vm5047_vm15, %v3499_v36 }
  0xc3   : > { %1559 = vmatprep.mubr.f32.mxu1 %v3010_v1  ;;  %2903 = vmatpush1.bf16.msk.msra.mxu1 %vm4012_vm2, %v3011_v15  ;;  %vm5052_vm2 = vmmov %vm5050_vm3 }
  0xc4   : > { %2662 = vmatmul.mubr.msk.f32.gmra.mrb[72].mxu0 %vm5048_vm6, %v3574_v41  ;;  %vm5053_vm12 = vmmov %vm5052_vm2 }
  0xc5   : > { %1404 = vmatprep.mubr.f32.mxu0 %v3010_v1  ;;  %vm5054_vm10 = vmmov %vm5052_vm2 }
  0xc6   : > { %2694 = vmatmul.mubr.msk.f32.gmra.mrb[72].mxu1 %vm5049_vm14, %v3574_v41  ;;  %vm5055_vm7 = vmmov %vm5052_vm2 }
  0xc7   : > { %1565 = vmatprep.mubr.f32.mxu1 %v3010_v1  ;;  %vm5056_vm1 = vmmov %vm5052_vm2 }
  0xc8   : > { %2663 = vmatmul.mubr.msk.f32.gmra.mrb[74].mxu0 %vm5036_vm4, %v3628_v43  ;;  %vm5057_vm13 = vmmov %vm5056_vm1 }
  0xc9   : > { %1410 = vmatprep.mubr.f32.mxu0 %v3010_v1  ;;  %vm5058_vm11 = vmmov %vm5056_vm1 }
  0xca   : > { %2695 = vmatmul.mubr.msk.f32.gmra.mrb[74].mxu1 %vm5050_vm3, %v3628_v43  ;;  %vm5059_vm0 = vmmov %vm5056_vm1 }
  0xcb   : > { %1571 = vmatprep.mubr.f32.mxu1 %v3010_v1  ;;  %vm5060_vm9 = vmmov %vm5059_vm0 }
  0xcc   : > { %2664 = vmatmul.mubr.msk.f32.gmra.mrb[76].mxu0 %vm5051_vm8, %v3694_v48  ;;  %vm5061_vm5 = vmmov %vm5059_vm0 }
  0xcd   : > { %1416 = vmatprep.mubr.f32.mxu0 %v3010_v1  ;;  %vm5062_vm15 = vmmov %vm5059_vm0 }
  0xce   : > { %2696 = vmatmul.mubr.msk.f32.gmra.mrb[76].mxu1 %vm5052_vm2, %v3694_v48  ;;  %vm5063_vm6 = vmmov %vm5059_vm0 }
  0xcf   : > { %1577 = vmatprep.mubr.f32.mxu1 %v3010_v1  ;;  %vm5064_vm14 = vmmov %vm5059_vm0 }
  0xd0   : > { %2665 = vmatmul.mubr.msk.f32.gmra.mrb[78].mxu0 %vm5053_vm12, %v3741_v53  ;;  %vm5065_vm4 = vmmov %vm5059_vm0 }
  0xd1   : > { %1422 = vmatprep.mubr.f32.mxu0 %v3010_v1  ;;  %vm5066_vm3 = vmmov %vm5059_vm0 }
  0xd2   : > { %2697 = vmatmul.mubr.msk.f32.gmra.mrb[78].mxu1 %vm5054_vm10, %v3741_v53  ;;  %vm5067_vm8 = vmmov %vm5059_vm0 }
  0xd3   : > { %1583 = vmatprep.mubr.f32.mxu1 %v3010_v1  ;;  %vm5068_vm2 = vmmov %vm5059_vm0 }
  0xd4   : > { %2666 = vmatmul.mubr.msk.f32.gmra.mrb[80].mxu0 %vm5055_vm7, %v3784_v58  ;;  %vm5069_vm12 = vmmov %vm5059_vm0 }
  0xd5   : > { %1428 = vmatprep.mubr.f32.mxu0 %v3010_v1  ;;  %vm5070_vm10 = vmmov %vm5059_vm0 }
  0xd6   : > { %2698 = vmatmul.mubr.msk.f32.gmra.mrb[80].mxu1 %vm5056_vm1, %v3784_v58  ;;  %vm5071_vm7 = vmmov %vm5059_vm0 }
  0xd7   : > { %1589 = vmatprep.mubr.f32.mxu1 %v3010_v1  ;;  %vm5072_vm1 = vmmov %vm5059_vm0 }
  0xd8   : > { %2667 = vmatmul.mubr.msk.f32.gmra.mrb[82].mxu0 %vm5057_vm13, %v3830_v63  ;;  %vm5073_vm13 = vmmov %vm5059_vm0 }
  0xd9   : > { %1434 = vmatprep.mubr.f32.mxu0 %v3010_v1 }
  0xda   : > { %2699 = vmatmul.mubr.msk.f32.gmra.mrb[82].mxu1 %vm5058_vm11, %v3830_v63  ;;  %vm5074_vm11 = vmmov %vm5059_vm0 }
  0xdb   : > { %1595 = vmatprep.mubr.f32.mxu1 %v3010_v1 }
  0xdc   : > { %2668 = vmatmul.mubr.msk.f32.gmra.mrb[84].mxu0 %vm5059_vm0, %v3894_v6 }
  0xdd   : > { %1440 = vmatprep.mubr.f32.mxu0 %v3010_v1 }
  0xde   : > { %2700 = vmatmul.mubr.msk.f32.gmra.mrb[84].mxu1 %vm5060_vm9, %v3894_v6  ;;  %vm5075_vm9 = vmmov %vm5059_vm0 }
  0xdf   : > { %1601 = vmatprep.mubr.f32.mxu1 %v3010_v1 }
  0xe0   : > { %2669 = vmatmul.mubr.msk.f32.gmra.mrb[86].mxu0 %vm5061_vm5, %v3939_v11  ;;  %vm5076_vm5 = vmmov %vm5059_vm0 }
  0xe1   : > { %1446 = vmatprep.mubr.f32.mxu0 %v3010_v1 }
  0xe2   : > { %2701 = vmatmul.mubr.msk.f32.gmra.mrb[86].mxu1 %vm5062_vm15, %v3939_v11  ;;  %vm5077_vm15 = vmmov %vm5059_vm0 }
  0xe3   : > { %1607 = vmatprep.mubr.f32.mxu1 %v3010_v1 }
  0xe4   : > { %2670 = vmatmul.mubr.msk.f32.gmra.mrb[88].mxu0 %vm5063_vm6, %v3960_v13  ;;  %vm5078_vm6 = vmmov %vm5059_vm0 }
  0xe5   : > { %1452 = vmatprep.mubr.f32.mxu0 %v3010_v1 }
  0xe6   : > { %2702 = vmatmul.mubr.msk.f32.gmra.mrb[88].mxu1 %vm5064_vm14, %v3960_v13  ;;  %vm5079_vm14 = vmmov %vm5059_vm0 }
  0xe7   : > { %1613 = vmatprep.mubr.f32.mxu1 %v3010_v1 }
  0xe8   : > { %2671 = vmatmul.mubr.msk.f32.gmra.mrb[90].mxu0 %vm5065_vm4, %v3971_v14  ;;  %vm5080_vm4 = vmmov %vm5059_vm0 }
  0xe9   : > { %1458 = vmatprep.mubr.f32.mxu0 %v3010_v1 }
  0xea   : > { %2703 = vmatmul.mubr.msk.f32.gmra.mrb[90].mxu1 %vm5066_vm3, %v3971_v14  ;;  %vm5081_vm3 = vmmov %vm5059_vm0 }
  0xeb   : > { %1619 = vmatprep.mubr.f32.mxu1 %v3010_v1 }
  0xec   : > { %2672 = vmatmul.mubr.msk.f32.gmra.mrb[92].mxu0 %vm5067_vm8, %v4010_v18  ;;  %vm5082_vm8 = vmmov %vm5059_vm0 }
  0xed   : > { %1464 = vmatprep.mubr.f32.mxu0 %v3010_v1 }
  0xee   : > { %2704 = vmatmul.mubr.msk.f32.gmra.mrb[92].mxu1 %vm5068_vm2, %v4010_v18  ;;  %vm5083_vm2 = vmmov %vm5059_vm0 }
  0xef   : > { %1625 = vmatprep.mubr.f32.mxu1 %v3010_v1 }
  0xf0   : > { %2673 = vmatmul.mubr.msk.f32.gmra.mrb[94].mxu0 %vm5069_vm12, %v4025_v20  ;;  %vm5084_vm12 = vmmov %vm5059_vm0 }
  0xf1   : > { %1696 = vmatprep.mubr.f32.mxu0 %v3010_v1 }
  0xf2   : > { %2705 = vmatmul.mubr.msk.f32.gmra.mrb[94].mxu1 %vm5070_vm10, %v4025_v20  ;;  %vm5085_vm10 = vmmov %vm5059_vm0 }
  0xf3   : > { %1857 = vmatprep.mubr.f32.mxu1 %v3010_v1 }
  0xf4   : > { %2722 = vmatmul.mubr.msk.f32.vlgmr.msra.gmra.mrb[96].mxu0 %vm5071_vm7, %v3300_v29  ;;  %vm5086_vm7 = vmmov %vm5059_vm0 }
  0xf5   : > { %1702 = vmatprep.mubr.f32.mxu0 %v3010_v1 }
  0xf6   : > { %2754 = vmatmul.mubr.msk.f32.vlgmr.msra.gmra.mrb[96].mxu1 %vm5072_vm1, %v3300_v29  ;;  %vm5087_vm1 = vmmov %vm5059_vm0 }
  0xf7   : > { %1863 = vmatprep.mubr.f32.mxu1 %v3010_v1 }
  0xf8   : > { %2723 = vmatmul.mubr.msk.f32.gmra.mrb[98].mxu0 %vm5073_vm13, %v3373_v32  ;;  %vm5088_vm13 = vmmov %vm5059_vm0 }
  0xf9   : > { %1708 = vmatprep.mubr.f32.mxu0 %v3010_v1 }
  0xfa   : > { %2755 = vmatmul.mubr.msk.f32.gmra.mrb[98].mxu1 %vm5074_vm11, %v3373_v32  ;;  %vm5089_vm11 = vmmov %vm5059_vm0 }
  0xfb   : > { %1869 = vmatprep.mubr.f32.mxu1 %v3010_v1 }
  0xfc   : > { %2724 = vmatmul.mubr.msk.f32.gmra.mrb[100].mxu0 %vm5059_vm0, %v3430_v33 }
  0xfd   : > { %1714 = vmatprep.mubr.f32.mxu0 %v3010_v1 }
  0xfe   : > { %2756 = vmatmul.mubr.msk.f32.gmra.mrb[100].mxu1 %vm5075_vm9, %v3430_v33  ;;  %vm5090_vm9 = vmmov %vm5059_vm0 }
  0xff   : > { %1875 = vmatprep.mubr.f32.mxu1 %v3010_v1 }
 0x100   : > { %2725 = vmatmul.mubr.msk.f32.gmra.mrb[102].mxu0 %vm5076_vm5, %v3499_v36  ;;  %vm5091_vm5 = vmmov %vm5059_vm0 }
 0x101   : > { %1720 = vmatprep.mubr.f32.mxu0 %v3010_v1 }
 0x102   : > { %2757 = vmatmul.mubr.msk.f32.gmra.mrb[102].mxu1 %vm5077_vm15, %v3499_v36  ;;  %vm5092_vm15 = vmmov %vm5059_vm0 }
 0x103   : > { %1881 = vmatprep.mubr.f32.mxu1 %v3010_v1  ;;  %v4346_v15 = vpop.f32.mrb[0].mxu0 }
 0x104   : > { %2726 = vmatmul.mubr.msk.f32.gmra.mrb[104].mxu0 %vm5078_vm6, %v3574_v41  ;;  %v4348_v22 = vpop.f32.mrb[0].mxu1  ;;  %v4350_v23 = vpop.f32.mrb[1].mxu0  ;;  %vm5093_vm6 = vmmov %vm5059_vm0 }
 0x105   : > { %1726 = vmatprep.mubr.f32.mxu0 %v3010_v1  ;;  %v4354_v24 = vpop.f32.mrb[1].mxu1 }
 0x106   : > { %2758 = vmatmul.mubr.msk.f32.gmra.mrb[104].mxu1 %vm5079_vm14, %v3574_v41  ;;  %vm5094_vm14 = vmmov %vm5059_vm0 }
 0x107   : > { %1887 = vmatprep.mubr.f32.mxu1 %v3010_v1  ;;  %v4360_v25 = vpop.f32.mrb[2].mxu0 }
 0x108   : > { %2727 = vmatmul.mubr.msk.f32.gmra.mrb[106].mxu0 %vm5080_vm4, %v3628_v43  ;;  %v4362_v26 = vpop.f32.mrb[2].mxu1  ;;  %v4364_v27 = vpop.f32.mrb[3].mxu0  ;;  %vm5095_vm4 = vmmov %vm5059_vm0 }
 0x109   : > { %1732 = vmatprep.mubr.f32.mxu0 %v3010_v1  ;;  %v4368_v28 = vpop.f32.mrb[3].mxu1 }
 0x10a   : > { %2759 = vmatmul.mubr.msk.f32.gmra.mrb[106].mxu1 %vm5081_vm3, %v3628_v43  ;;  %vm5096_vm3 = vmmov %vm5059_vm0 }
 0x10b   : > { %1893 = vmatprep.mubr.f32.mxu1 %v3010_v1  ;;  %v4374_v29 = vpop.f32.mrb[4].mxu0 }
 0x10c   : > { %2728 = vmatmul.mubr.msk.f32.gmra.mrb[108].mxu0 %vm5082_vm8, %v3694_v48  ;;  %v4376_v30 = vpop.f32.mrb[4].mxu1  ;;  %v4378_v31 = vpop.f32.mrb[5].mxu0  ;;  %vm5097_vm8 = vmmov %vm5059_vm0 }
 0x10d   : > { %1738 = vmatprep.mubr.f32.mxu0 %v3010_v1  ;;  %v4382_v32 = vpop.f32.mrb[5].mxu1 }
 0x10e   : > { %2760 = vmatmul.mubr.msk.f32.gmra.mrb[108].mxu1 %vm5083_vm2, %v3694_v48  ;;  %vm5098_vm2 = vmmov %vm5059_vm0 }
 0x10f   : > { %1899 = vmatprep.mubr.f32.mxu1 %v3010_v1  ;;  %v4388_v33 = vpop.f32.mrb[6].mxu0 }
 0x110   : > { %2729 = vmatmul.mubr.msk.f32.gmra.mrb[110].mxu0 %vm5084_vm12, %v3741_v53  ;;  %v4390_v34 = vpop.f32.mrb[6].mxu1  ;;  %v4392_v35 = vpop.f32.mrb[7].mxu0  ;;  %vm5099_vm12 = vmmov %vm5059_vm0 }
 0x111   : > { %1744 = vmatprep.mubr.f32.mxu0 %v3010_v1  ;;  %v4396_v36 = vpop.f32.mrb[7].mxu1 }
 0x112   : > { %2761 = vmatmul.mubr.msk.f32.gmra.mrb[110].mxu1 %vm5085_vm10, %v3741_v53  ;;  %vm5100_vm10 = vmmov %vm5059_vm0 }
 0x113   : > { %1905 = vmatprep.mubr.f32.mxu1 %v3010_v1  ;;  %v4402_v37 = vpop.f32.mrb[8].mxu0 }
 0x114   : > { %2730 = vmatmul.mubr.msk.f32.gmra.mrb[112].mxu0 %vm5086_vm7, %v3784_v58  ;;  %v4404_v38 = vpop.f32.mrb[8].mxu1  ;;  %v4406_v39 = vpop.f32.mrb[9].mxu0 }
 0x115   : > { %1750 = vmatprep.mubr.f32.mxu0 %v3010_v1  ;;  %v4410_v40 = vpop.f32.mrb[9].mxu1 }
 0x116   : > { %2762 = vmatmul.mubr.msk.f32.gmra.mrb[112].mxu1 %vm5087_vm1, %v3784_v58 }
 0x117   : > { %1911 = vmatprep.mubr.f32.mxu1 %v3010_v1  ;;  %v4416_v41 = vpop.f32.mrb[10].mxu0 }
 0x118   : > { %2731 = vmatmul.mubr.msk.f32.gmra.mrb[114].mxu0 %vm5088_vm13, %v3830_v63  ;;  %v4418_v42 = vpop.f32.mrb[10].mxu1  ;;  %v4420_v43 = vpop.f32.mrb[11].mxu0 }
 0x119   : > { %1756 = vmatprep.mubr.f32.mxu0 %v3010_v1  ;;  %v4424_v44 = vpop.f32.mrb[11].mxu1 }
 0x11a   : > { %2763 = vmatmul.mubr.msk.f32.gmra.mrb[114].mxu1 %vm5089_vm11, %v3830_v63 }
 0x11b   : > { %1917 = vmatprep.mubr.f32.mxu1 %v3010_v1  ;;  %v4430_v45 = vpop.f32.mrb[12].mxu0 }
 0x11c   : > { %2732 = vmatmul.mubr.msk.f32.gmra.mrb[116].mxu0 %vm5059_vm0, %v3894_v6  ;;  %v4434_v47 = vpop.f32.mrb[13].mxu0 }
 0x11d   : > { %1762 = vmatprep.mubr.f32.mxu0 %v3010_v1  ;;  %v4432_v46 = vpop.f32.mrb[12].mxu1 }
 0x11e   : > { %2764 = vmatmul.mubr.msk.f32.gmra.mrb[116].mxu1 %vm5090_vm9, %v3894_v6  ;;  %v4438_v48 = vpop.f32.mrb[13].mxu1 }
 0x11f   : > { %1923 = vmatprep.mubr.f32.mxu1 %v3010_v1  ;;  %v4444_v49 = vpop.f32.mrb[14].mxu0 }
 0x120   : > { %2733 = vmatmul.mubr.msk.f32.gmra.mrb[118].mxu0 %vm5091_vm5, %v3939_v11  ;;  %v4448_v51 = vpop.f32.mrb[15].mxu0 }
 0x121   : > { %1768 = vmatprep.mubr.f32.mxu0 %v3010_v1 }
 0x122   : > { %2765 = vmatmul.mubr.msk.f32.gmra.mrb[118].mxu1 %vm5092_vm15, %v3939_v11  ;;  %v4446_v50 = vpop.f32.mrb[14].mxu1 }
 0x123   : > { %1929 = vmatprep.mubr.f32.mxu1 %v3010_v1  ;;  %v4452_v52 = vpop.f32.mrb[15].mxu1 }
 0x124   : > { %2734 = vmatmul.mubr.msk.f32.gmra.mrb[120].mxu0 %vm5093_vm6, %v3960_v13  ;;  %v4458_v53 = vpop.f32.mrb[16].mxu0 }
 0x125   : > { %1774 = vmatprep.mubr.f32.mxu0 %v3010_v1  ;;  %v4462_v55 = vpop.f32.mrb[17].mxu0 }
 0x126   : > { %2766 = vmatmul.mubr.msk.f32.gmra.mrb[120].mxu1 %vm5094_vm14, %v3960_v13 }
 0x127   : > { %1935 = vmatprep.mubr.f32.mxu1 %v3010_v1  ;;  %v4460_v54 = vpop.f32.mrb[16].mxu1 }
 0x128   : > { %2735 = vmatmul.mubr.msk.f32.gmra.mrb[122].mxu0 %vm5095_vm4, %v3971_v14  ;;  %v4466_v56 = vpop.f32.mrb[17].mxu1  ;;  %v4472_v57 = vpop.f32.mrb[18].mxu0 }
 0x129   : > { %1780 = vmatprep.mubr.f32.mxu0 %v3010_v1  ;;  %v4476_v59 = vpop.f32.mrb[19].mxu0 }
 0x12a   : > { %2767 = vmatmul.mubr.msk.f32.gmra.mrb[122].mxu1 %vm5096_vm3, %v3971_v14 }
 0x12b   : > { %1941 = vmatprep.mubr.f32.mxu1 %v3010_v1 }
 0x12c   : > { %v4474_v58 = vpop.f32.mrb[18].mxu1  ;;  %2736 = vmatmul.mubr.msk.f32.gmra.mrb[124].mxu0 %vm5097_vm8, %v4010_v18 }
 0x12d   : > { %v4480_v60 = vpop.f32.mrb[19].mxu1  ;;  %1786 = vmatprep.mubr.f32.mxu0 %v3010_v1  ;;  %v4486_v61 = vpop.f32.mrb[20].mxu0 }
 0x12e   : > { %2768 = vmatmul.mubr.msk.f32.gmra.mrb[124].mxu1 %vm5098_vm2, %v4010_v18  ;;  %v4490_v63 = vpop.f32.mrb[21].mxu0 }
 0x12f   : > { %1947 = vmatprep.mubr.f32.mxu1 %v3010_v1 }
 0x130   : > { %2737 = vmatmul.mubr.msk.f32.gmra.mrb[126].mxu0 %vm5099_vm12, %v4025_v20 }
 0x131   : > { %v4488_v62 = vpop.f32.mrb[20].mxu1 }
 0x132   : > { %v4494_v0 = vpop.f32.mrb[21].mxu1  ;;  %2769 = vmatmul.mubr.msk.f32.gmra.mrb[126].mxu1 %vm5100_vm10, %v4025_v20 }
 0x133   : > { %v4498_v3 = vpop.f32.mrb[22].mxu0 }
 0x134   : > { %v4502_v5 = vpop.f32.mrb[23].mxu0 }
 0x135   : > { %v4500_v4 = vpop.f32.mrb[22].mxu1 }
 0x136   : > { %v4504_v1 = vpop.f32.mrb[23].mxu1 }
 0x137   : > { %5101 = vst [vmem:[#allocation6_spill] sm:$0xff] %v4504_v1  ;;  %v4506_v6 = vpop.f32.mrb[24].mxu0 }
 0x138   : > { %5102 = vst [vmem:[#allocation7_spill] sm:$0xff] %v4506_v6  ;;  %v4510_v8 = vpop.f32.mrb[25].mxu0 }
 0x139   : > { %v4508_v7 = vpop.f32.mrb[24].mxu1  ;;  %5104 = vst [vmem:[#allocation9_spill] sm:$0xff] %v4510_v8 }
 0x13a   : > { %5103 = vst [vmem:[#allocation8_spill] sm:$0xff] %v4508_v7  ;;  %v4512_v9 = vpop.f32.mrb[25].mxu1 }
 0x13b   : > { %5105 = vst [vmem:[#allocation10_spill] sm:$0xff] %v4512_v9  ;;  %v4514_v10 = vpop.f32.mrb[26].mxu0 }
 0x13c   : > { %5106 = vst [vmem:[#allocation11_spill] sm:$0xff] %v4514_v10  ;;  %v4518_v12 = vpop.f32.mrb[27].mxu0 }
 0x13d   : > { %v4516_v11 = vpop.f32.mrb[26].mxu1  ;;  %5108 = vst [vmem:[#allocation13_spill] sm:$0xff] %v4518_v12 }
 0x13e   : > { %5107 = vst [vmem:[#allocation12_spill] sm:$0xff] %v4516_v11  ;;  %v4520_v13 = vpop.f32.mrb[27].mxu1 }
 0x13f   : > { %5109 = vst [vmem:[#allocation14_spill] sm:$0xff] %v4520_v13  ;;  %v4522_v14 = vpop.f32.mrb[28].mxu0 }
 0x140   : > { %5110 = vst [vmem:[#allocation15_spill] sm:$0xff] %v4522_v14  ;;  %v4526_v17 = vpop.f32.mrb[29].mxu0 }
 0x141   : > { %v4524_v16 = vpop.f32.mrb[28].mxu1  ;;  %5112 = vst [vmem:[#allocation17_spill] sm:$0xff] %v4526_v17 }
 0x142   : > { %5111 = vst [vmem:[#allocation16_spill] sm:$0xff] %v4524_v16  ;;  %v4528_v19 = vpop.f32.mrb[29].mxu1 }
 0x143   : > { %5113 = vst [vmem:[#allocation18_spill] sm:$0xff] %v4528_v19  ;;  %v4530_v18 = vpop.f32.mrb[30].mxu0 }
 0x144   : > { %5114 = vst [vmem:[#allocation19_spill] sm:$0xff] %v4530_v18  ;;  %v4534_v20 = vpop.f32.mrb[31].mxu0 }
 0x145   : > { %v4532_v21 = vpop.f32.mrb[30].mxu1  ;;  %5116 = vst [vmem:[#allocation21_spill] sm:$0xff] %v4534_v20 }
 0x146   : > { %5115 = vst [vmem:[#allocation20_spill] sm:$0xff] %v4532_v21  ;;  %v4536_v2 = vpop.f32.mrb[31].mxu1 }
 0x147   : > { %5117 = vst [vmem:[#allocation22_spill] sm:$0xff] %v4536_v2  ;;  %v4538_v11 = vpop.f32.mrb[32].mxu0 }
 0x148   : > { %5118 = vst [vmem:[#allocation23_spill] sm:$0xff] %v4538_v11  ;;  %v4542_v13 = vpop.f32.mrb[33].mxu0 }
 0x149   : > { %v4540_v12 = vpop.f32.mrb[32].mxu1  ;;  %5120 = vst [vmem:[#allocation25_spill] sm:$0xff] %v4542_v13 }
 0x14a   : > { %5119 = vst [vmem:[#allocation24_spill] sm:$0xff] %v4540_v12  ;;  %v4544_v14 = vpop.f32.mrb[33].mxu1 }
 0x14b   : > { %5121 = vst [vmem:[#allocation26_spill] sm:$0xff] %v4544_v14  ;;  %v4546_v16 = vpop.f32.mrb[34].mxu0 }
 0x14c   : > { %5122 = vst [vmem:[#allocation27_spill] sm:$0xff] %v4546_v16  ;;  %v4550_v19 = vpop.f32.mrb[35].mxu0 }
 0x14d   : > { %v4548_v17 = vpop.f32.mrb[34].mxu1  ;;  %5124 = vst [vmem:[#allocation29_spill] sm:$0xff] %v4550_v19 }
 0x14e   : > { %5123 = vst [vmem:[#allocation28_spill] sm:$0xff] %v4548_v17  ;;  %v4552_v18 = vpop.f32.mrb[35].mxu1 }
 0x14f   : > { %5125 = vst [vmem:[#allocation30_spill] sm:$0xff] %v4552_v18  ;;  %v4554_v21 = vpop.f32.mrb[36].mxu0 }
 0x150   : > { %5126 = vst [vmem:[#allocation31_spill] sm:$0xff] %v4554_v21  ;;  %v4558_v2 = vpop.f32.mrb[37].mxu0 }
 0x151   : > { %v4556_v20 = vpop.f32.mrb[36].mxu1  ;;  %5128 = vst [vmem:[#allocation33_spill] sm:$0xff] %v4558_v2 }
 0x152   : > { %5127 = vst [vmem:[#allocation32_spill] sm:$0xff] %v4556_v20  ;;  %v4560_v11 = vpop.f32.mrb[37].mxu1 }
 0x153   : > { %5129 = vst [vmem:[#allocation34_spill] sm:$0xff] %v4560_v11  ;;  %v4562_v12 = vpop.f32.mrb[38].mxu0 }
 0x154   : > { %5130 = vst [vmem:[#allocation35_spill] sm:$0xff] %v4562_v12  ;;  %v4566_v14 = vpop.f32.mrb[39].mxu0 }
 0x155   : > { %v4564_v13 = vpop.f32.mrb[38].mxu1  ;;  %5132 = vst [vmem:[#allocation37_spill] sm:$0xff] %v4566_v14 }
 0x156   : > { %5131 = vst [vmem:[#allocation36_spill] sm:$0xff] %v4564_v13  ;;  %v4568_v16 = vpop.f32.mrb[39].mxu1 }
 0x157   : > { %5133 = vst [vmem:[#allocation38_spill] sm:$0xff] %v4568_v16  ;;  %v4570_v17 = vpop.f32.mrb[40].mxu0 }
 0x158   : > { %5134 = vst [vmem:[#allocation39_spill] sm:$0xff] %v4570_v17  ;;  %v4574_v18 = vpop.f32.mrb[41].mxu0 }
 0x159   : > { %v4572_v19 = vpop.f32.mrb[40].mxu1  ;;  %5136 = vst [vmem:[#allocation41_spill] sm:$0xff] %v4574_v18 }
 0x15a   : > { %5135 = vst [vmem:[#allocation40_spill] sm:$0xff] %v4572_v19  ;;  %v4576_v21 = vpop.f32.mrb[41].mxu1 }
 0x15b   : > { %5137 = vst [vmem:[#allocation42_spill] sm:$0xff] %v4576_v21  ;;  %v4578_v20 = vpop.f32.mrb[42].mxu0 }
 0x15c   : > { %5138 = vst [vmem:[#allocation43_spill] sm:$0xff] %v4578_v20  ;;  %v4582_v11 = vpop.f32.mrb[43].mxu0 }
 0x15d   : > { %v4580_v2 = vpop.f32.mrb[42].mxu1  ;;  %5140 = vst [vmem:[#allocation45_spill] sm:$0xff] %v4582_v11 }
 0x15e   : > { %5139 = vst [vmem:[#allocation44_spill] sm:$0xff] %v4580_v2  ;;  %v4584_v12 = vpop.f32.mrb[43].mxu1 }
 0x15f   : > { %5141 = vst [vmem:[#allocation46_spill] sm:$0xff] %v4584_v12  ;;  %v4586_v13 = vpop.f32.mrb[44].mxu0 }
 0x160   : > { %5142 = vst [vmem:[#allocation47_spill] sm:$0xff] %v4586_v13  ;;  %v4590_v16 = vpop.f32.mrb[45].mxu0 }
 0x161   : > { %v4588_v14 = vpop.f32.mrb[44].mxu1  ;;  %5144 = vst [vmem:[#allocation49_spill] sm:$0xff] %v4590_v16 }
 0x162   : > { %5143 = vst [vmem:[#allocation48_spill] sm:$0xff] %v4588_v14  ;;  %v4592_v17 = vpop.f32.mrb[45].mxu1 }
 0x163   : > { %5145 = vst [vmem:[#allocation50_spill] sm:$0xff] %v4592_v17  ;;  %v4594_v19 = vpop.f32.mrb[46].mxu0 }
 0x164   : > { %5146 = vst [vmem:[#allocation51_spill] sm:$0xff] %v4594_v19  ;;  %v4598_v21 = vpop.f32.mrb[47].mxu0 }
 0x165   : > { %v4596_v18 = vpop.f32.mrb[46].mxu1  ;;  %5148 = vst [vmem:[#allocation53_spill] sm:$0xff] %v4598_v21 }
 0x166   : > { %5147 = vst [vmem:[#allocation52_spill] sm:$0xff] %v4596_v18  ;;  %v4600_v20 = vpop.f32.mrb[47].mxu1 }
 0x167   : > { %5149 = vst [vmem:[#allocation54_spill] sm:$0xff] %v4600_v20  ;;  %v4602_v2 = vpop.f32.mrb[48].mxu0 }
 0x168   : > { %5150 = vst [vmem:[#allocation55_spill] sm:$0xff] %v4602_v2  ;;  %v4606_v12 = vpop.f32.mrb[49].mxu0 }
 0x169   : > { %v4604_v11 = vpop.f32.mrb[48].mxu1  ;;  %5152 = vst [vmem:[#allocation57_spill] sm:$0xff] %v4606_v12 }
 0x16a   : > { %5151 = vst [vmem:[#allocation56_spill] sm:$0xff] %v4604_v11  ;;  %v4608_v13 = vpop.f32.mrb[49].mxu1 }
 0x16b   : > { %5153 = vst [vmem:[#allocation58_spill] sm:$0xff] %v4608_v13  ;;  %v4610_v14 = vpop.f32.mrb[50].mxu0 }
 0x16c   : > { %5154 = vst [vmem:[#allocation59_spill] sm:$0xff] %v4610_v14  ;;  %v4614_v17 = vpop.f32.mrb[51].mxu0 }
 0x16d   : > { %v4612_v16 = vpop.f32.mrb[50].mxu1  ;;  %5156 = vst [vmem:[#allocation61_spill] sm:$0xff] %v4614_v17 }
 0x16e   : > { %5155 = vst [vmem:[#allocation60_spill] sm:$0xff] %v4612_v16  ;;  %v4616_v19 = vpop.f32.mrb[51].mxu1 }
 0x16f   : > { %5157 = vst [vmem:[#allocation62_spill] sm:$0xff] %v4616_v19  ;;  %v4618_v18 = vpop.f32.mrb[52].mxu0 }
 0x170   : > { %5158 = vst [vmem:[#allocation63_spill] sm:$0xff] %v4618_v18  ;;  %v4622_v20 = vpop.f32.mrb[53].mxu0 }
 0x171   : > { %v4620_v21 = vpop.f32.mrb[52].mxu1  ;;  %5160 = vst [vmem:[#allocation65_spill] sm:$0xff] %v4622_v20 }
 0x172   : > { %5159 = vst [vmem:[#allocation64_spill] sm:$0xff] %v4620_v21  ;;  %v4624_v2 = vpop.f32.mrb[53].mxu1 }
 0x173   : > { %5161 = vst [vmem:[#allocation66_spill] sm:$0xff] %v4624_v2  ;;  %v4626_v11 = vpop.f32.mrb[54].mxu0 }
 0x174   : > { %5162 = vst [vmem:[#allocation67_spill] sm:$0xff] %v4626_v11  ;;  %v4630_v13 = vpop.f32.mrb[55].mxu0 }
 0x175   : > { %v4628_v12 = vpop.f32.mrb[54].mxu1  ;;  %5164 = vst [vmem:[#allocation69_spill] sm:$0xff] %v4630_v13 }
 0x176   : > { %5163 = vst [vmem:[#allocation68_spill] sm:$0xff] %v4628_v12  ;;  %v4632_v14 = vpop.f32.mrb[55].mxu1 }
 0x177   : > { %5165 = vst [vmem:[#allocation70_spill] sm:$0xff] %v4632_v14  ;;  %v4634_v16 = vpop.f32.mrb[56].mxu0 }
 0x178   : > { %5166 = vst [vmem:[#allocation71_spill] sm:$0xff] %v4634_v16  ;;  %v4638_v19 = vpop.f32.mrb[57].mxu0 }
 0x179   : > { %v4636_v17 = vpop.f32.mrb[56].mxu1  ;;  %5168 = vst [vmem:[#allocation73_spill] sm:$0xff] %v4638_v19 }
 0x17a   : > { %5167 = vst [vmem:[#allocation72_spill] sm:$0xff] %v4636_v17  ;;  %v4640_v18 = vpop.f32.mrb[57].mxu1 }
 0x17b   : > { %5169 = vst [vmem:[#allocation74_spill] sm:$0xff] %v4640_v18  ;;  %v4642_v21 = vpop.f32.mrb[58].mxu0 }
 0x17c   : > { %5170 = vst [vmem:[#allocation75_spill] sm:$0xff] %v4642_v21  ;;  %v4646_v2 = vpop.f32.mrb[59].mxu0 }
 0x17d   : > { %v4644_v20 = vpop.f32.mrb[58].mxu1  ;;  %5172 = vst [vmem:[#allocation77_spill] sm:$0xff] %v4646_v2 }
 0x17e   : > { %5171 = vst [vmem:[#allocation76_spill] sm:$0xff] %v4644_v20  ;;  %v4648_v11 = vpop.f32.mrb[59].mxu1 }
 0x17f   : > { %5173 = vst [vmem:[#allocation78_spill] sm:$0xff] %v4648_v11  ;;  %v4650_v12 = vpop.f32.mrb[60].mxu0 }
 0x180   : > { %5174 = vst [vmem:[#allocation79_spill] sm:$0xff] %v4650_v12  ;;  %v4654_v14 = vpop.f32.mrb[61].mxu0 }
 0x181   : > { %v4652_v13 = vpop.f32.mrb[60].mxu1  ;;  %5176 = vst [vmem:[#allocation81_spill] sm:$0xff] %v4654_v14 }
 0x182   : > { %5175 = vst [vmem:[#allocation80_spill] sm:$0xff] %v4652_v13  ;;  %v4656_v16 = vpop.f32.mrb[61].mxu1 }
 0x183   : > { %5177 = vst [vmem:[#allocation82_spill] sm:$0xff] %v4656_v16  ;;  %v4658_v17 = vpop.f32.mrb[62].mxu0 }
 0x184   : > { %5178 = vst [vmem:[#allocation83_spill] sm:$0xff] %v4658_v17  ;;  %v4662_v18 = vpop.f32.mrb[63].mxu0 }
 0x185   : > { %v4660_v19 = vpop.f32.mrb[62].mxu1  ;;  %5180 = vst [vmem:[#allocation85_spill] sm:$0xff] %v4662_v18 }
 0x186   : > { %5179 = vst [vmem:[#allocation84_spill] sm:$0xff] %v4660_v19  ;;  %v4664_v21 = vpop.f32.mrb[63].mxu1 }
 0x187   : > { %5181 = vst [vmem:[#allocation86_spill] sm:$0xff] %v4664_v21  ;;  %v1376_v20 = vpop.f32.mrb[64].mxu0 }
 0x188   : > { %v1954_v2 = vmul.f32 %v1376_v20, %v4346_v15  ;;  %v1378_v10 = vpop.f32.mrb[65].mxu0 }
 0x189   : > { %v1537_v11 = vpop.f32.mrb[64].mxu1  ;;  %v1955_v13 = vmul.f32 %v1378_v10, %v4350_v23 }
 0x18a   : > { %v1956_v12 = vmul.f32 %v1537_v11, %v4348_v22  ;;  %v1539_v14 = vpop.f32.mrb[65].mxu1 }
 0x18b   : > { %v1957_v16 = vmul.f32 %v1539_v14, %v4354_v24  ;;  %v1382_v9 = vpop.f32.mrb[66].mxu0 }
 0x18c   : > { %v1962_v17 = vmul.f32 %v1382_v9, %v4360_v25  ;;  %v1384_v8 = vpop.f32.mrb[67].mxu0 }
 0x18d   : > { %v1543_v19 = vpop.f32.mrb[66].mxu1  ;;  %v1963_v21 = vmul.f32 %v1384_v8, %v4364_v27 }
 0x18e   : > { %v1964_v18 = vmul.f32 %v1543_v19, %v4362_v26  ;;  %v1545_v7 = vpop.f32.mrb[67].mxu1  ;;  %v2082_v15 = vadd.f32 %v1962_v17, %v1954_v2 }
 0x18f   : > { %v1965_v20 = vmul.f32 %v1545_v7, %v4368_v28  ;;  %v2103_v22 = vadd.f32 %v1963_v21, %v1955_v13  ;;  %v1388_v11 = vpop.f32.mrb[68].mxu0 }
 0x190   : > { %v2124_v6 = vadd.f32 %v1964_v18, %v1956_v12  ;;  %v1970_v10 = vmul.f32 %v1388_v11, %v4374_v29  ;;  %v1390_v14 = vpop.f32.mrb[69].mxu0 }
 0x191   : > { %v2145_v23 = vadd.f32 %v1965_v20, %v1957_v16  ;;  %v1549_v24 = vpop.f32.mrb[68].mxu1  ;;  %v1971_v9 = vmul.f32 %v1390_v14, %v4378_v31 }
 0x192   : > { %v1972_v25 = vmul.f32 %v1549_v24, %v4376_v30  ;;  %v1551_v1 = vpop.f32.mrb[69].mxu1  ;;  %v2083_v26 = vadd.f32 %v2082_v15, %v1970_v10 }
 0x193   : > { %v1973_v27 = vmul.f32 %v1551_v1, %v4382_v32  ;;  %v2104_v2 = vadd.f32 %v2103_v22, %v1971_v9  ;;  %v1394_v17 = vpop.f32.mrb[70].mxu0 }
 0x194   : > { %v2125_v8 = vadd.f32 %v2124_v6, %v1972_v25  ;;  %v1978_v7 = vmul.f32 %v1394_v17, %v4388_v33  ;;  %v1396_v13 = vpop.f32.mrb[71].mxu0 }
 0x195   : > { %v2146_v28 = vadd.f32 %v2145_v23, %v1973_v27  ;;  %v1555_v12 = vpop.f32.mrb[70].mxu1  ;;  %v1979_v16 = vmul.f32 %v1396_v13, %v4392_v35 }
 0x196   : > { %v1980_v29 = vmul.f32 %v1555_v12, %v4390_v34  ;;  %v1557_v19 = vpop.f32.mrb[71].mxu1  ;;  %v2084_v30 = vadd.f32 %v2083_v26, %v1978_v7 }
 0x197   : > { %v1981_v31 = vmul.f32 %v1557_v19, %v4396_v36  ;;  %v2105_v21 = vadd.f32 %v2104_v2, %v1979_v16  ;;  %v1400_v15 = vpop.f32.mrb[72].mxu0 }
 0x198   : > { %v2126_v18 = vadd.f32 %v2125_v8, %v1980_v29  ;;  %v1986_v1 = vmul.f32 %v1400_v15, %v4402_v37  ;;  %v1402_v20 = vpop.f32.mrb[73].mxu0 }
 0x199   : > { %v2147_v32 = vadd.f32 %v2146_v28, %v1981_v31  ;;  %v1561_v6 = vpop.f32.mrb[72].mxu1  ;;  %v1987_v22 = vmul.f32 %v1402_v20, %v4406_v39 }
 0x19a   : > { %v1988_v33 = vmul.f32 %v1561_v6, %v4404_v38  ;;  %v1563_v11 = vpop.f32.mrb[73].mxu1  ;;  %v2085_v34 = vadd.f32 %v2084_v30, %v1986_v1 }
 0x19b   : > { %v1989_v35 = vmul.f32 %v1563_v11, %v4410_v40  ;;  %v2106_v10 = vadd.f32 %v2105_v21, %v1987_v22  ;;  %v1406_v24 = vpop.f32.mrb[74].mxu0 }
 0x19c   : > { %v2127_v23 = vadd.f32 %v2126_v18, %v1988_v33  ;;  %v1994_v14 = vmul.f32 %v1406_v24, %v4416_v41  ;;  %v1408_v9 = vpop.f32.mrb[75].mxu0 }
 0x19d   : > { %v2148_v36 = vadd.f32 %v2147_v32, %v1989_v35  ;;  %v1567_v25 = vpop.f32.mrb[74].mxu1  ;;  %v1995_v26 = vmul.f32 %v1408_v9, %v4420_v43 }
 0x19e   : > { %v1996_v37 = vmul.f32 %v1567_v25, %v4418_v42  ;;  %v1569_v27 = vpop.f32.mrb[75].mxu1  ;;  %v2086_v38 = vadd.f32 %v2085_v34, %v1994_v14 }
 0x19f   : > { %v1997_v39 = vmul.f32 %v1569_v27, %v4424_v44  ;;  %v2107_v2 = vadd.f32 %v2106_v10, %v1995_v26  ;;  %v1412_v17 = vpop.f32.mrb[76].mxu0 }
 0x1a0   : > { %v2128_v8 = vadd.f32 %v2127_v23, %v1996_v37  ;;  %v2002_v28 = vmul.f32 %v1412_v17, %v4430_v45  ;;  %v1414_v12 = vpop.f32.mrb[77].mxu0 }
 0x1a1   : > { %v2149_v40 = vadd.f32 %v2148_v36, %v1997_v39  ;;  %v1573_v7 = vpop.f32.mrb[76].mxu1  ;;  %v2003_v13 = vmul.f32 %v1414_v12, %v4434_v47 }
 0x1a2   : > { %v2004_v41 = vmul.f32 %v1573_v7, %v4432_v46  ;;  %v1575_v29 = vpop.f32.mrb[77].mxu1  ;;  %v2087_v42 = vadd.f32 %v2086_v38, %v2002_v28 }
 0x1a3   : > { %v2005_v43 = vmul.f32 %v1575_v29, %v4438_v48  ;;  %v2108_v19 = vadd.f32 %v2107_v2, %v2003_v13  ;;  %v1418_v30 = vpop.f32.mrb[78].mxu0 }
 0x1a4   : > { %v2129_v16 = vadd.f32 %v2128_v8, %v2004_v41  ;;  %v2010_v31 = vmul.f32 %v1418_v30, %v4444_v49  ;;  %v1420_v21 = vpop.f32.mrb[79].mxu0 }
 0x1a5   : > { %v2150_v44 = vadd.f32 %v2149_v40, %v2005_v43  ;;  %v1579_v18 = vpop.f32.mrb[78].mxu1  ;;  %v2011_v15 = vmul.f32 %v1420_v21, %v4448_v51 }
 0x1a6   : > { %v2012_v45 = vmul.f32 %v1579_v18, %v4446_v50  ;;  %v1581_v32 = vpop.f32.mrb[79].mxu1  ;;  %v2088_v46 = vadd.f32 %v2087_v42, %v2010_v31  ;;  %v5183_v31 = vld [vmem:[#allocation7_spill] sm:$0xff] }
 0x1a7   : > { %v2013_v47 = vmul.f32 %v1581_v32, %v4452_v52  ;;  %v2109_v6 = vadd.f32 %v2108_v19, %v2011_v15  ;;  %v1424_v20 = vpop.f32.mrb[80].mxu0  ;;  %v5184_v15 = vld [vmem:[#allocation8_spill] sm:$0xff]  ;;  %v5185_v32 = vld [vmem:[#allocation9_spill] sm:$0xff] }
 0x1a8   : > { %v2130_v1 = vadd.f32 %v2129_v16, %v2012_v45  ;;  %v2018_v33 = vmul.f32 %v1424_v20, %v4458_v53  ;;  %v1426_v11 = vpop.f32.mrb[81].mxu0  ;;  %v5182_v16 = vld [vmem:[#allocation6_spill] sm:$0xff] }
 0x1a9   : > { %v2151_v48 = vadd.f32 %v2150_v44, %v2013_v47  ;;  %v1585_v22 = vpop.f32.mrb[80].mxu1  ;;  %v2019_v34 = vmul.f32 %v1426_v11, %v4462_v55 }
 0x1aa   : > { %v2020_v49 = vmul.f32 %v1585_v22, %v4460_v54  ;;  %v1587_v35 = vpop.f32.mrb[81].mxu1  ;;  %v2089_v50 = vadd.f32 %v2088_v46, %v2018_v33  ;;  %v5187_v22 = vld [vmem:[#allocation11_spill] sm:$0xff] }
 0x1ab   : > { %v2021_v51 = vmul.f32 %v1587_v35, %v4466_v56  ;;  %v2110_v10 = vadd.f32 %v2109_v6, %v2019_v34  ;;  %v1430_v24 = vpop.f32.mrb[82].mxu0  ;;  %v5188_v35 = vld [vmem:[#allocation12_spill] sm:$0xff] }
 0x1ac   : > { %v2131_v23 = vadd.f32 %v2130_v1, %v2020_v49  ;;  %v2026_v36 = vmul.f32 %v1430_v24, %v4472_v57  ;;  %v1432_v25 = vpop.f32.mrb[83].mxu0  ;;  %v5186_v1 = vld [vmem:[#allocation10_spill] sm:$0xff] }
 0x1ad   : > { %v2152_v52 = vadd.f32 %v2151_v48, %v2021_v51  ;;  %v1591_v14 = vpop.f32.mrb[82].mxu1  ;;  %v2027_v9 = vmul.f32 %v1432_v25, %v4476_v59  ;;  %v5189_v51 = vld [vmem:[#allocation13_spill] sm:$0xff] }
 0x1ae   : > { %v2028_v53 = vmul.f32 %v1591_v14, %v4474_v58  ;;  %v1593_v37 = vpop.f32.mrb[83].mxu1  ;;  %v2090_v54 = vadd.f32 %v2089_v50, %v2026_v36 }
 0x1af   : > { %v2029_v55 = vmul.f32 %v1593_v37, %v4480_v60  ;;  %v2111_v27 = vadd.f32 %v2110_v10, %v2027_v9  ;;  %v1436_v38 = vpop.f32.mrb[84].mxu0  ;;  %v5191_v37 = vld [vmem:[#allocation15_spill] sm:$0xff] }
 0x1b0   : > { %v2132_v26 = vadd.f32 %v2131_v23, %v2028_v53  ;;  %v2034_v39 = vmul.f32 %v1436_v38, %v4486_v61  ;;  %v1438_v2 = vpop.f32.mrb[85].mxu0 }
 0x1b1   : > { %v2153_v56 = vadd.f32 %v2152_v52, %v2029_v55  ;;  %v1597_v8 = vpop.f32.mrb[84].mxu1  ;;  %v2035_v17 = vmul.f32 %v1438_v2, %v4490_v63  ;;  %v5190_v52 = vld [vmem:[#allocation14_spill] sm:$0xff] }
 0x1b2   : > { %v2036_v57 = vmul.f32 %v1597_v8, %v4488_v62  ;;  %v1599_v40 = vpop.f32.mrb[85].mxu1  ;;  %v2091_v58 = vadd.f32 %v2090_v54, %v2034_v39 }
 0x1b3   : > { %v2037_v59 = vmul.f32 %v1599_v40, %v4494_v0  ;;  %v2112_v7 = vadd.f32 %v2111_v27, %v2035_v17  ;;  %v1442_v12 = vpop.f32.mrb[86].mxu0  ;;  %v5192_v27 = vld [vmem:[#allocation16_spill] sm:$0xff] }
 0x1b4   : > { %v2133_v28 = vadd.f32 %v2132_v26, %v2036_v57  ;;  %v2042_v41 = vmul.f32 %v1442_v12, %v4498_v3  ;;  %v1444_v29 = vpop.f32.mrb[87].mxu0  ;;  %v5194_v57 = vld [vmem:[#allocation18_spill] sm:$0xff] }
 0x1b5   : > { %v2154_v60 = vadd.f32 %v2153_v56, %v2037_v59  ;;  %v1603_v13 = vpop.f32.mrb[86].mxu1  ;;  %v2043_v42 = vmul.f32 %v1444_v29, %v4502_v5  ;;  %v5193_v56 = vld [vmem:[#allocation17_spill] sm:$0xff] }
 0x1b6   : > { %v2044_v61 = vmul.f32 %v1603_v13, %v4500_v4  ;;  %v1605_v43 = vpop.f32.mrb[87].mxu1  ;;  %v2092_v62 = vadd.f32 %v2091_v58, %v2042_v41  ;;  %v3012_v13 = vmov 1966171168  }
 0x1b7   : > { %v2045_v63 = vmul.f32 %v1605_v43, %v5182_v16  ;;  %v2113_v30 = vadd.f32 %v2112_v7, %v2043_v42  ;;  %v1448_v44 = vpop.f32.mrb[88].mxu0  ;;  %v5195_v7 = vld [vmem:[#allocation19_spill] sm:$0xff]  ;;  %v2263_v29 = vunpack.c.l.s4 %v3012_v13  ;;  %v5197_v43 = vld [vmem:[#allocation21_spill] sm:$0xff] }
 0x1b8   : > { %v2134_v19 = vadd.f32 %v2133_v28, %v2044_v61  ;;  %v2050_v18 = vmul.f32 %v1448_v44, %v5183_v31  ;;  %v1450_v45 = vpop.f32.mrb[89].mxu0  ;;  %v5196_v61 = vld [vmem:[#allocation20_spill] sm:$0xff] }
 0x1b9   : > { %v2155_v0 = vadd.f32 %v2154_v60, %v2045_v63  ;;  %v1609_v21 = vpop.f32.mrb[88].mxu1  ;;  %v2051_v46 = vmul.f32 %v1450_v45, %v5185_v32  ;;  %v5199_v45 = vld [vmem:[#allocation23_spill] sm:$0xff] }
 0x1ba   : > { %v2052_v3 = vmul.f32 %v1609_v21, %v5184_v15  ;;  %v1611_v47 = vpop.f32.mrb[89].mxu1  ;;  %v2093_v4 = vadd.f32 %v2092_v62, %v2050_v18 }
 0x1bb   : > { %v2053_v5 = vmul.f32 %v1611_v47, %v5186_v1  ;;  %v2114_v20 = vadd.f32 %v2113_v30, %v2051_v46  ;;  %v1454_v48 = vpop.f32.mrb[90].mxu0  ;;  %v2264_v46 = vunpack.c.0.s8 %v2263_v29  ;;  %v5200_v1 = vld [vmem:[#allocation24_spill] sm:$0xff] }
 0x1bc   : > { %v2135_v6 = vadd.f32 %v2134_v19, %v2052_v3  ;;  %v2058_v11 = vmul.f32 %v1454_v48, %v5187_v22  ;;  %v1456_v34 = vpop.f32.mrb[91].mxu0  ;;  %v5198_v19 = vld [vmem:[#allocation22_spill] sm:$0xff] }
 0x1bd   : > { %v2156_v33 = vadd.f32 %v2155_v0, %v2053_v5  ;;  %v1615_v49 = vpop.f32.mrb[90].mxu1  ;;  %v2059_v23 = vmul.f32 %v1456_v34, %v5189_v51 }
 0x1be   : > { %v2060_v50 = vmul.f32 %v1615_v49, %v5188_v35  ;;  %v1617_v10 = vpop.f32.mrb[91].mxu1  ;;  %v2094_v24 = vadd.f32 %v2093_v4, %v2058_v11  ;;  %v5202_v11 = vld [vmem:[#allocation26_spill] sm:$0xff] }
 0x1bf   : > { %v2061_v36 = vmul.f32 %v1617_v10, %v5190_v52  ;;  %v2115_v25 = vadd.f32 %v2114_v20, %v2059_v23  ;;  %v1460_v53 = vpop.f32.mrb[92].mxu0  ;;  %v5203_v10 = vld [vmem:[#allocation27_spill] sm:$0xff] }
 0x1c0   : > { %v2136_v14 = vadd.f32 %v2135_v6, %v2060_v50  ;;  %v2066_v54 = vmul.f32 %v1460_v53, %v5191_v37  ;;  %v1462_v26 = vpop.f32.mrb[93].mxu0  ;;  %v5201_v6 = vld [vmem:[#allocation25_spill] sm:$0xff]  ;;  %v5205_v37 = vld [vmem:[#allocation28_spill] sm:$0xff] }
 0x1c1   : > { %v2157_v9 = vadd.f32 %v2156_v33, %v2061_v36  ;;  %v1621_v55 = vpop.f32.mrb[92].mxu1  ;;  %v2067_v39 = vmul.f32 %v1462_v26, %v5193_v56 }
 0x1c2   : > { %v2068_v38 = vmul.f32 %v1621_v55, %v5192_v27  ;;  %v1623_v8 = vpop.f32.mrb[93].mxu1  ;;  %v2095_v2 = vadd.f32 %v2094_v24, %v2066_v54  ;;  %v5206_v55 = vld [vmem:[#allocation29_spill] sm:$0xff] }
 0x1c3   : > { %v2069_v17 = vmul.f32 %v1623_v8, %v5194_v57  ;;  %v2116_v58 = vadd.f32 %v2115_v25, %v2067_v39  ;;  %v1466_v59 = vpop.f32.mrb[94].mxu0  ;;  %v5207_v8 = vld [vmem:[#allocation30_spill] sm:$0xff] }
 0x1c4   : > { %v2137_v40 = vadd.f32 %v2136_v14, %v2068_v38  ;;  %v2074_v12 = vmul.f32 %v1466_v59, %v5195_v7  ;;  %v1468_v41 = vpop.f32.mrb[95].mxu0  ;;  %v5204_v14 = vld [vmem:[#allocation5_spill] sm:$0xff] }
 0x1c5   : > { %v2158_v28 = vadd.f32 %v2157_v9, %v2069_v17  ;;  %v1627_v60 = vpop.f32.mrb[94].mxu1  ;;  %v2075_v62 = vmul.f32 %v1468_v41, %v5197_v43  ;;  %v4736_v25 = vsub.s32 %v2264_v46, %v5204_v14  ;;  %v5209_v43 = vld [vmem:[#allocation32_spill] sm:$0xff]  ;;  %v5216_v14 = vld [vmem:[#allocation39_spill] sm:$0xff] }
 0x1c6   : > { %v2076_v42 = vmul.f32 %v1627_v60, %v5196_v61  ;;  %v1629_v16 = vpop.f32.mrb[95].mxu1  ;;  %v2096_v63 = vadd.f32 %v2095_v2, %v2074_v12  ;;  %v5208_v60 = vld [vmem:[#allocation31_spill] sm:$0xff] }
 0x1c7   : > { %v2077_v30 = vmul.f32 %v1629_v16, %v5198_v19  ;;  %v2117_v0 = vadd.f32 %v2116_v58, %v2075_v62  ;;  %v1698_v31 = vpop.f32.mrb[96].mxu0  ;;  %v5210_v16 = vld [vmem:[#allocation33_spill] sm:$0xff] }
 0x1c8   : > { %v2138_v44 = vadd.f32 %v2137_v40, %v2076_v42  ;;  %v2097_v18 = vrot.slane %v2096_v63, 4  ;;  %v1958_v15 = vmul.f32 %v1698_v31, %v5199_v45  ;;  %v1700_v32 = vpop.f32.mrb[97].mxu0  ;;  %v5211_v31 = vld [vmem:[#allocation34_spill] sm:$0xff] }
 0x1c9   : > { %v2159_v21 = vadd.f32 %v2158_v28, %v2077_v30  ;;  %v1859_v3 = vpop.f32.mrb[96].mxu1  ;;  %v2118_v4 = vrot.slane %v2117_v0, 4  ;;  %v1959_v20 = vmul.f32 %v1700_v32, %v5201_v6 }
 0x1ca   : > { %v2139_v47 = vrot.slane %v2138_v44, 4  ;;  %v1960_v5 = vmul.f32 %v1859_v3, %v5200_v1  ;;  %v1861_v48 = vpop.f32.mrb[97].mxu1  ;;  %v2098_v33 = vadd.f32 %v2097_v18, %v2096_v63 }
 0x1cb   : > { %v2160_v22 = vrot.slane %v2159_v21, 4  ;;  %v1961_v49 = vmul.f32 %v1861_v48, %v5202_v11  ;;  %v2119_v35 = vadd.f32 %v2118_v4, %v2117_v0  ;;  %v1704_v50 = vpop.f32.mrb[98].mxu0  ;;  %v5212_v4 = vld [vmem:[#allocation35_spill] sm:$0xff]  ;;  %v5213_v48 = vld [vmem:[#allocation36_spill] sm:$0xff] }
 0x1cc   : > { %v2140_v34 = vadd.f32 %v2139_v47, %v2138_v44  ;;  %v2099_v51 = vrot.slane %v2098_v33, 2  ;;  %v1966_v24 = vmul.f32 %v1704_v50, %v5203_v10  ;;  %v1706_v36 = vpop.f32.mrb[99].mxu0  ;;  %v5215_v50 = vld [vmem:[#allocation38_spill] sm:$0xff] }
 0x1cd   : > { %v2161_v23 = vadd.f32 %v2160_v22, %v2159_v21  ;;  %v1865_v52 = vpop.f32.mrb[98].mxu1  ;;  %v2120_v9 = vrot.slane %v2119_v35, 2  ;;  %v1967_v26 = vmul.f32 %v1706_v36, %v5206_v55  ;;  %v5214_v22 = vld [vmem:[#allocation37_spill] sm:$0xff]  ;;  %v5217_v55 = vld [vmem:[#allocation40_spill] sm:$0xff] }
 0x1ce   : > { %v2141_v53 = vrot.slane %v2140_v34, 2  ;;  %v1968_v54 = vmul.f32 %v1865_v52, %v5205_v37  ;;  %v1867_v27 = vpop.f32.mrb[99].mxu1  ;;  %v2100_v38 = vadd.f32 %v2099_v51, %v2098_v33  ;;  %v2166_v39 = vadd.f32 %v1966_v24, %v1958_v15 }
 0x1cf   : > { %v2162_v56 = vrot.slane %v2161_v23, 2  ;;  %v1969_v2 = vmul.f32 %v1867_v27, %v5207_v8  ;;  %v2121_v17 = vadd.f32 %v2120_v9, %v2119_v35  ;;  %v2187_v58 = vadd.f32 %v1967_v26, %v1959_v20  ;;  %v1710_v59 = vpop.f32.mrb[100].mxu0  ;;  %v5218_v27 = vld [vmem:[#allocation41_spill] sm:$0xff]  ;;  %v5219_v8 = vld [vmem:[#allocation42_spill] sm:$0xff] }
 0x1d0   : > { %v2142_v57 = vadd.f32 %v2141_v53, %v2140_v34  ;;  %v2208_v40 = vadd.f32 %v1968_v54, %v1960_v5  ;;  %v2101_v28 = vrot.slane %v2100_v38, 1  ;;  %v1974_v41 = vmul.f32 %v1710_v59, %v5208_v60  ;;  %v1712_v29 = vpop.f32.mrb[101].mxu0 }
 0x1d1   : > { %v2163_v7 = vadd.f32 %v2162_v56, %v2161_v23  ;;  %v2229_v12 = vadd.f32 %v1969_v2, %v1961_v49  ;;  %v1871_v13 = vpop.f32.mrb[100].mxu1  ;;  %v2122_v42 = vrot.slane %v2121_v17, 1  ;;  %v1975_v63 = vmul.f32 %v1712_v29, %v5210_v16  ;;  %v5222_v29 = vld [vmem:[#allocation45_spill] sm:$0xff] }
 0x1d2   : > { %v2143_v61 = vrot.slane %v2142_v57, 1  ;;  %v1976_v62 = vmul.f32 %v1871_v13, %v5209_v43  ;;  %v1873_v19 = vpop.f32.mrb[101].mxu1  ;;  %v2102_v30 = vadd.f32 %v2101_v28, %v2100_v38  ;;  %v2167_v0 = vadd.f32 %v2166_v39, %v1974_v41  ;;  %v5220_v28 = vld [vmem:[#allocation43_spill] sm:$0xff]  ;;  %v5221_v41 = vld [vmem:[#allocation44_spill] sm:$0xff] }
 0x1d3   : > { %v2164_v44 = vrot.slane %v2163_v7, 1  ;;  %v1977_v18 = vmul.f32 %v1873_v19, %v5211_v31  ;;  %v2123_v45 = vadd.f32 %v2122_v42, %v2121_v17  ;;  %v2188_v3 = vadd.f32 %v2187_v58, %v1975_v63  ;;  %v1716_v32 = vpop.f32.mrb[102].mxu0 }
 0x1d4   : > { %v2144_v21 = vadd.f32 %v2143_v61, %v2142_v57  ;;  %v2209_v15 = vadd.f32 %v2208_v40, %v1976_v62  ;;  %v1982_v1 = vmul.f32 %v1716_v32, %v5212_v4  ;;  %v1718_v6 = vpop.f32.mrb[103].mxu0  ;;  %v5223_v62 = vld [vmem:[#allocation46_spill] sm:$0xff] }
 0x1d5   : > { %v2165_v46 = vadd.f32 %v2164_v44, %v2163_v7  ;;  %v2230_v47 = vadd.f32 %v2229_v12, %v1977_v18  ;;  %v1877_v5 = vpop.f32.mrb[102].mxu1  ;;  %v2258_v20 = vcombine.low %v2102_v30, %v2123_v45  ;;  %v1983_v11 = vmul.f32 %v1718_v6, %v5214_v22  ;;  %v5225_v45 = vld [vmem:[#allocation48_spill] sm:$0xff]  ;;  %v5227_v4 = vld [vmem:[#allocation50_spill] sm:$0xff] }
 0x1d6   : > { %v1984_v33 = vmul.f32 %v1877_v5, %v5213_v48  ;;  %v1879_v49 = vpop.f32.mrb[103].mxu1  ;;  %v2168_v35 = vadd.f32 %v2167_v0, %v1982_v1  ;;  %v5224_v0 = vld [vmem:[#allocation47_spill] sm:$0xff] }
 0x1d7   : > { %v2259_v34 = vcombine.low %v2144_v21, %v2165_v46  ;;  %v1985_v51 = vmul.f32 %v1879_v49, %v5215_v50  ;;  %v2189_v10 = vadd.f32 %v2188_v3, %v1983_v11  ;;  %v1722_v24 = vpop.f32.mrb[104].mxu0  ;;  %v4750_v52 = vrot.slane %v2258_v20, %v4736_v25  ;;  %v5226_v3 = vld [vmem:[#allocation49_spill] sm:$0xff] }
 0x1d8   : > { %v2210_v23 = vadd.f32 %v2209_v15, %v1984_v33  ;;  %v1990_v53 = vmul.f32 %v1722_v24, %v5216_v14  ;;  %v1724_v37 = vpop.f32.mrb[105].mxu0  ;;  %v5228_v33 = vld [vmem:[#allocation51_spill] sm:$0xff]  ;;  %v5230_v50 = vld [vmem:[#allocation53_spill] sm:$0xff]  ;;  %v5231_v24 = vld [vmem:[#allocation54_spill] sm:$0xff] }
 0x1d9   : > { %v2231_v36 = vadd.f32 %v2230_v47, %v1985_v51  ;;  %v1883_v9 = vpop.f32.mrb[104].mxu1  ;;  %v4754_v54 = vrot.slane %v2259_v34, %v4736_v25  ;;  %v1991_v38 = vmul.f32 %v1724_v37, %v5218_v27  ;;  %v5229_v34 = vld [vmem:[#allocation52_spill] sm:$0xff] }
 0x1da   : > { %v1992_v26 = vmul.f32 %v1883_v9, %v5217_v55  ;;  %v1885_v56 = vpop.f32.mrb[105].mxu1  ;;  %v2169_v39 = vadd.f32 %v2168_v35, %v1990_v53  ;;  %v5232_v55 = vld [vmem:[#allocation55_spill] sm:$0xff] }
 0x1db   : > { %v1993_v2 = vmul.f32 %v1885_v56, %v5219_v8  ;;  %v2290_v57 = vcombine.low %v4750_v52, %v4754_v54  ;;  %v2190_v40 = vadd.f32 %v2189_v10, %v1991_v38  ;;  %v1728_v58 = vpop.f32.mrb[106].mxu0  ;;  %v5233_v56 = vld [vmem:[#allocation56_spill] sm:$0xff]  ;;  %v5234_v8 = vld [vmem:[#allocation57_spill] sm:$0xff] }
 0x1dc   : > { %v2211_v17 = vadd.f32 %v2210_v23, %v1992_v26  ;;  %v1998_v7 = vmul.f32 %v1728_v58, %v5220_v28  ;;  %v1730_v60 = vpop.f32.mrb[107].mxu0  ;;  %v5235_v58 = vld [vmem:[#allocation58_spill] sm:$0xff] }
 0x1dd   : > { %v2232_v59 = vadd.f32 %v2231_v36, %v1993_v2  ;;  %v1889_v12 = vpop.f32.mrb[106].mxu1  ;;  %v1999_v61 = vmul.f32 %v1730_v60, %v5222_v29 }
 0x1de   : > { %v2000_v13 = vmul.f32 %v1889_v12, %v5221_v41  ;;  %v1891_v42 = vpop.f32.mrb[107].mxu1  ;;  %v2170_v43 = vadd.f32 %v2169_v39, %v1998_v7  ;;  %v5236_v41 = vld [vmem:[#allocation59_spill] sm:$0xff] }
 0x1df   : > { %v2001_v16 = vmul.f32 %v1891_v42, %v5223_v62  ;;  %v2191_v19 = vadd.f32 %v2190_v40, %v1999_v61  ;;  %v1734_v30 = vpop.f32.mrb[108].mxu0  ;;  %v5237_v42 = vld [vmem:[#allocation60_spill] sm:$0xff]  ;;  %v5238_v62 = vld [vmem:[#allocation61_spill] sm:$0xff] }
 0x1e0   : > { %v2212_v63 = vadd.f32 %v2211_v17, %v2000_v13  ;;  %v2006_v31 = vmul.f32 %v1734_v30, %v5224_v0  ;;  %v1736_v21 = vpop.f32.mrb[109].mxu0  ;;  %v5239_v30 = vld [vmem:[#allocation62_spill] sm:$0xff] }
 0x1e1   : > { %v2233_v44 = vadd.f32 %v2232_v59, %v2001_v16  ;;  %v1895_v18 = vpop.f32.mrb[108].mxu1  ;;  %v2007_v32 = vmul.f32 %v1736_v21, %v5226_v3 }
 0x1e2   : > { %v2008_v15 = vmul.f32 %v1895_v18, %v5225_v45  ;;  %v1897_v46 = vpop.f32.mrb[109].mxu1  ;;  %v2171_v47 = vadd.f32 %v2170_v43, %v2006_v31  ;;  %v5240_v45 = vld [vmem:[#allocation63_spill] sm:$0xff] }
 0x1e3   : > { %v2009_v1 = vmul.f32 %v1897_v46, %v5227_v4  ;;  %v2192_v6 = vadd.f32 %v2191_v19, %v2007_v32  ;;  %v1740_v20 = vpop.f32.mrb[110].mxu0  ;;  %v5241_v46 = vld [vmem:[#allocation64_spill] sm:$0xff]  ;;  %v5242_v4 = vld [vmem:[#allocation65_spill] sm:$0xff] }
 0x1e4   : > { %v2213_v5 = vadd.f32 %v2212_v63, %v2008_v15  ;;  %v2014_v22 = vmul.f32 %v1740_v20, %v5228_v33  ;;  %v1742_v49 = vpop.f32.mrb[111].mxu0  ;;  %v5243_v20 = vld [vmem:[#allocation66_spill] sm:$0xff] }
 0x1e5   : > { %v2234_v48 = vadd.f32 %v2233_v44, %v2009_v1  ;;  %v1901_v11 = vpop.f32.mrb[110].mxu1  ;;  %v2015_v51 = vmul.f32 %v1742_v49, %v5230_v50 }
 0x1e6   : > { %v2016_v35 = vmul.f32 %v1901_v11, %v5229_v34  ;;  %v1903_v23 = vpop.f32.mrb[111].mxu1  ;;  %v2172_v10 = vadd.f32 %v2171_v47, %v2014_v22  ;;  %v5244_v34 = vld [vmem:[#allocation67_spill] sm:$0xff] }
 0x1e7   : > { %v2017_v36 = vmul.f32 %v1903_v23, %v5231_v24  ;;  %v2193_v53 = vadd.f32 %v2192_v6, %v2015_v51  ;;  %v1746_v9 = vpop.f32.mrb[112].mxu0  ;;  %v5245_v23 = vld [vmem:[#allocation68_spill] sm:$0xff]  ;;  %v5246_v24 = vld [vmem:[#allocation69_spill] sm:$0xff] }
 0x1e8   : > { %v2214_v14 = vadd.f32 %v2213_v5, %v2016_v35  ;;  %v2022_v26 = vmul.f32 %v1746_v9, %v5232_v55  ;;  %v1748_v38 = vpop.f32.mrb[113].mxu0  ;;  %v5247_v9 = vld [vmem:[#allocation70_spill] sm:$0xff] }
 0x1e9   : > { %v2235_v37 = vadd.f32 %v2234_v48, %v2017_v36  ;;  %v1907_v27 = vpop.f32.mrb[112].mxu1  ;;  %v2023_v2 = vmul.f32 %v1748_v38, %v5234_v8 }
 0x1ea   : > { %v2024_v39 = vmul.f32 %v1907_v27, %v5233_v56  ;;  %v1909_v17 = vpop.f32.mrb[113].mxu1  ;;  %v2173_v40 = vadd.f32 %v2172_v10, %v2022_v26  ;;  %v5248_v56 = vld [vmem:[#allocation71_spill] sm:$0xff] }
 0x1eb   : > { %v2025_v59 = vmul.f32 %v1909_v17, %v5235_v58  ;;  %v2194_v7 = vadd.f32 %v2193_v53, %v2023_v2  ;;  %v1752_v12 = vpop.f32.mrb[114].mxu0  ;;  %v5249_v17 = vld [vmem:[#allocation72_spill] sm:$0xff]  ;;  %v5250_v58 = vld [vmem:[#allocation73_spill] sm:$0xff] }
 0x1ec   : > { %v2215_v28 = vadd.f32 %v2214_v14, %v2024_v39  ;;  %v2030_v13 = vmul.f32 %v1752_v12, %v5236_v41  ;;  %v1754_v61 = vpop.f32.mrb[115].mxu0  ;;  %v5251_v12 = vld [vmem:[#allocation74_spill] sm:$0xff] }
 0x1ed   : > { %v2236_v60 = vadd.f32 %v2235_v37, %v2025_v59  ;;  %v1913_v29 = vpop.f32.mrb[114].mxu1  ;;  %v2031_v16 = vmul.f32 %v1754_v61, %v5238_v62 }
 0x1ee   : > { %v2032_v43 = vmul.f32 %v1913_v29, %v5237_v42  ;;  %v1915_v63 = vpop.f32.mrb[115].mxu1  ;;  %v2174_v19 = vadd.f32 %v2173_v40, %v2030_v13  ;;  %v5252_v42 = vld [vmem:[#allocation75_spill] sm:$0xff] }
 0x1ef   : > { %v2033_v44 = vmul.f32 %v1915_v63, %v5239_v30  ;;  %v2195_v31 = vadd.f32 %v2194_v7, %v2031_v16  ;;  %v1758_v18 = vpop.f32.mrb[116].mxu0  ;;  %v5253_v63 = vld [vmem:[#allocation76_spill] sm:$0xff]  ;;  %v5254_v30 = vld [vmem:[#allocation77_spill] sm:$0xff] }
 0x1f0   : > { %v2216_v0 = vadd.f32 %v2215_v28, %v2032_v43  ;;  %v2038_v15 = vmul.f32 %v1758_v18, %v5240_v45  ;;  %v1760_v32 = vpop.f32.mrb[117].mxu0  ;;  %v5255_v18 = vld [vmem:[#allocation78_spill] sm:$0xff] }
 0x1f1   : > { %v2237_v21 = vadd.f32 %v2236_v60, %v2033_v44  ;;  %v1919_v3 = vpop.f32.mrb[116].mxu1  ;;  %v2039_v1 = vmul.f32 %v1760_v32, %v5242_v4 }
 0x1f2   : > { %v2040_v47 = vmul.f32 %v1919_v3, %v5241_v46  ;;  %v1921_v5 = vpop.f32.mrb[117].mxu1  ;;  %v2175_v6 = vadd.f32 %v2174_v19, %v2038_v15  ;;  %v5256_v46 = vld [vmem:[#allocation79_spill] sm:$0xff] }
 0x1f3   : > { %v2041_v48 = vmul.f32 %v1921_v5, %v5243_v20  ;;  %v2196_v22 = vadd.f32 %v2195_v31, %v2039_v1  ;;  %v1764_v11 = vpop.f32.mrb[118].mxu0  ;;  %v5257_v5 = vld [vmem:[#allocation80_spill] sm:$0xff]  ;;  %v5258_v20 = vld [vmem:[#allocation81_spill] sm:$0xff] }
 0x1f4   : > { %v2217_v33 = vadd.f32 %v2216_v0, %v2040_v47  ;;  %v2046_v35 = vmul.f32 %v1764_v11, %v5244_v34  ;;  %v1766_v51 = vpop.f32.mrb[119].mxu0  ;;  %v5259_v11 = vld [vmem:[#allocation82_spill] sm:$0xff] }
 0x1f5   : > { %v2238_v49 = vadd.f32 %v2237_v21, %v2041_v48  ;;  %v1925_v50 = vpop.f32.mrb[118].mxu1  ;;  %v2047_v36 = vmul.f32 %v1766_v51, %v5246_v24 }
 0x1f6   : > { %v2048_v10 = vmul.f32 %v1925_v50, %v5245_v23  ;;  %v1927_v14 = vpop.f32.mrb[119].mxu1  ;;  %v2176_v53 = vadd.f32 %v2175_v6, %v2046_v35  ;;  %v5260_v23 = vld [vmem:[#allocation83_spill] sm:$0xff] }
 0x1f7   : > { %v2049_v37 = vmul.f32 %v1927_v14, %v5247_v9  ;;  %v2197_v26 = vadd.f32 %v2196_v22, %v2047_v36  ;;  %v1770_v27 = vpop.f32.mrb[120].mxu0  ;;  %v5261_v14 = vld [vmem:[#allocation84_spill] sm:$0xff]  ;;  %v5262_v9 = vld [vmem:[#allocation85_spill] sm:$0xff] }
 0x1f8   : > { %v2218_v55 = vadd.f32 %v2217_v33, %v2048_v10  ;;  %v2054_v39 = vmul.f32 %v1770_v27, %v5248_v56  ;;  %v1772_v2 = vpop.f32.mrb[121].mxu0  ;;  %v5263_v27 = vld [vmem:[#allocation86_spill] sm:$0xff] }
 0x1f9   : > { %v2239_v38 = vadd.f32 %v2238_v49, %v2049_v37  ;;  %v1931_v8 = vpop.f32.mrb[120].mxu1  ;;  %v2055_v59 = vmul.f32 %v1772_v2, %v5250_v58 }
 0x1fa   : > { %v2056_v40 = vmul.f32 %v1931_v8, %v5249_v17  ;;  %v1933_v28 = vpop.f32.mrb[121].mxu1  ;;  %v2177_v7 = vadd.f32 %v2176_v53, %v2054_v39 }
 0x1fb   : > { %v2057_v60 = vmul.f32 %v1933_v28, %v5251_v12  ;;  %v2198_v13 = vadd.f32 %v2197_v26, %v2055_v59  ;;  %v1776_v29 = vpop.f32.mrb[122].mxu0 }
 0x1fc   : > { %v2219_v41 = vadd.f32 %v2218_v55, %v2056_v40  ;;  %v2062_v43 = vmul.f32 %v1776_v29, %v5252_v42  ;;  %v1778_v16 = vpop.f32.mrb[123].mxu0 }
 0x1fd   : > { %v2240_v61 = vadd.f32 %v2239_v38, %v2057_v60  ;;  %v1937_v62 = vpop.f32.mrb[122].mxu1  ;;  %v2063_v44 = vmul.f32 %v1778_v16, %v5254_v30 }
 0x1fe   : > { %v2064_v19 = vmul.f32 %v1937_v62, %v5253_v63  ;;  %v1939_v0 = vpop.f32.mrb[123].mxu1  ;;  %v2178_v31 = vadd.f32 %v2177_v7, %v2062_v43 }
 0x1ff   : > { %v2065_v21 = vmul.f32 %v1939_v0, %v5255_v18  ;;  %v2199_v15 = vadd.f32 %v2198_v13, %v2063_v44  ;;  %v1782_v3 = vpop.f32.mrb[124].mxu0 }
 0x200   : > { %v2220_v45 = vadd.f32 %v2219_v41, %v2064_v19  ;;  %v2070_v47 = vmul.f32 %v1782_v3, %v5256_v46  ;;  %v1784_v1 = vpop.f32.mrb[125].mxu0  ;;  %v2298_v46 = vrot.slane %v2290_v57, %v4736_v25 }
 0x201   : > { %v2241_v32 = vadd.f32 %v2240_v61, %v2065_v21  ;;  %v1943_v4 = vpop.f32.mrb[124].mxu1  ;;  %v2071_v48 = vmul.f32 %v1784_v1, %v5258_v20 }
 0x202   : > { %v2072_v6 = vmul.f32 %v1943_v4, %v5257_v5  ;;  %v1945_v33 = vpop.f32.mrb[125].mxu1  ;;  %v2179_v22 = vadd.f32 %v2178_v31, %v2070_v47 }
 0x203   : > { %v2073_v49 = vmul.f32 %v1945_v33, %v5259_v11  ;;  %v2200_v35 = vadd.f32 %v2199_v15, %v2071_v48  ;;  %v1788_v50 = vpop.f32.mrb[126].mxu0 }
 0x204   : > { %v2221_v34 = vadd.f32 %v2220_v45, %v2072_v6  ;;  %v2078_v10 = vmul.f32 %v1788_v50, %v5260_v23  ;;  %v1790_v36 = vpop.f32.mrb[127].mxu0 }
 0x205   : > { %v2242_v51 = vadd.f32 %v2241_v32, %v2073_v49  ;;  %v1949_v24 = vpop.f32.mrb[126].mxu1  ;;  %v2079_v37 = vmul.f32 %v1790_v36, %v5262_v9 }
 0x206   : > { %v2080_v53 = vmul.f32 %v1949_v24, %v5261_v14  ;;  %v1951_v55 = vpop.f32.mrb[127].mxu1  ;;  %v2180_v26 = vadd.f32 %v2179_v22, %v2078_v10 }
 0x207   : > { %v2081_v38 = vmul.f32 %v1951_v55, %v5263_v27  ;;  %v2201_v39 = vadd.f32 %v2200_v35, %v2079_v37 }
 0x208   : > { %v2222_v56 = vadd.f32 %v2221_v34, %v2080_v53  ;;  %v2181_v8 = vrot.slane %v2180_v26, 4 }
 0x209   : > { %v2243_v2 = vadd.f32 %v2242_v51, %v2081_v38  ;;  %v2202_v40 = vrot.slane %v2201_v39, 4 }
 0x20a   : > { %v2223_v17 = vrot.slane %v2222_v56, 4  ;;  %v2182_v58 = vadd.f32 %v2181_v8, %v2180_v26 }
 0x20b   : > { %v2244_v59 = vrot.slane %v2243_v2, 4  ;;  %v2203_v7 = vadd.f32 %v2202_v40, %v2201_v39 }
 0x20c   : > { %v2224_v28 = vadd.f32 %v2223_v17, %v2222_v56  ;;  %v2183_v12 = vrot.slane %v2182_v58, 2 }
 0x20d   : > { %v2245_v60 = vadd.f32 %v2244_v59, %v2243_v2  ;;  %v2204_v13 = vrot.slane %v2203_v7, 2 }
 0x20e   : > { %v2225_v41 = vrot.slane %v2224_v28, 2  ;;  %v2184_v29 = vadd.f32 %v2183_v12, %v2182_v58 }
 0x20f   : > { %v2246_v61 = vrot.slane %v2245_v60, 2  ;;  %v2205_v43 = vadd.f32 %v2204_v13, %v2203_v7 }
 0x210   : > { %v2226_v42 = vadd.f32 %v2225_v41, %v2224_v28  ;;  %v2185_v62 = vrot.slane %v2184_v29, 1 }
 0x211   : > { %v2247_v16 = vadd.f32 %v2246_v61, %v2245_v60  ;;  %v2206_v19 = vrot.slane %v2205_v43, 1 }
 0x212   : > { %v2227_v63 = vrot.slane %v2226_v42, 1  ;;  %v2186_v30 = vadd.f32 %v2185_v62, %v2184_v29 }
 0x213   : > { %v2248_v44 = vrot.slane %v2247_v16, 1  ;;  %v2207_v31 = vadd.f32 %v2206_v19, %v2205_v43 }
 0x214   : > { %v2228_v0 = vadd.f32 %v2227_v63, %v2226_v42 }
 0x215   : > { %v2249_v18 = vadd.f32 %v2248_v44, %v2247_v16  ;;  %v2260_v21 = vcombine.low %v2186_v30, %v2207_v31 }
 0x217   : > { %v2261_v45 = vcombine.low %v2228_v0, %v2249_v18  ;;  %v2282_v15 = vrot.slane %v2260_v21, %v4736_v25 }
 0x219   : > { %v2289_v3 = vrot.slane %v2261_v45, %v4736_v25 }
 0x21b   : > { %v2291_v32 = vcombine.low %v2282_v15, %v2289_v3 }
 0x21d   : > { %v2305_v47 = vrot.slane %v2291_v32, %v4736_v25 }
 0x21f   : > { %v2306_v4 = vcombine.low %v2298_v46, %v2305_v47 }
 0x221   : > { %2308 = vst [vmem:[%s135_s22] sm:$0xff] %v2306_v4 }
 0x222   : > { %2959 = shalt.err (!%p2956_p3)
}
 0x223   : > { %s2960_s3 = scalar_lea.hbm %s4817_s26, 128  ;;  %s2964_s6 = scalar_lea.hbm %s4861_s2, 256 }
 0x224   : > { %p2961_p4 = scmp.ne.s32.totalorder %s4817_s26, %s2960_s3  ;;  %p2965_p9 = scmp.lt.u32.totalorder %s4817_s26, %s4861_s2 }
 0x225   : > { %p2966_p10 = scmp.lt.u32.totalorder %s2964_s6, %s2960_s3  ;;  %p2968_p12 = scmp.lt.u32.totalorder %s2960_s3, %s4817_s26 }
 0x226   : > { %p2962_p7 = pnand %p2961_p4, %p3067_p5 }
 0x227   : > { %p2967_p11 = por %p2966_p10, %p2965_p9 }
 0x228   : > { %p2963_p8 = pneg %p2962_p7 }
 0x229   : > { %p2969_p13 = por %p2968_p12, %p2967_p11 }
 0x22b   : > { %p2970_p0 = pnand %p2969_p13, %p2963_p8 }
 0x22d   : > { %2973 = shalt.err (!%p2970_p0)
}
 0x22e   : > { %2904 = dma.vmem_to_hbm [thread:$0]  (%p3067_p5), %s4819_s23, 128, %s4817_s26, %s2310_s13  }
 0x22f PF: > { %p2910_p1 = scmp.ge.s32.totalorder %s3008_s12, 2  ;;  %s2336_s14 = sand.u32 1, %s2996_s9  }
 0x230   : > { %s2337_s16 = scalar_lea.sflag [#allocation3], %s2336_s14 }
 0x231   : > { %p2907_p2 = pnand %p2910_p1, %p3071_p6 }
 0x233   : > { %2991 = dma.done.wait (!%p2907_p2), %s2337_s16, 128  }
 0x234   : > { %2993 = vsyncadd (!%p2907_p2), %s2337_s16, 4294967168  ;;  %p12_p3 = scmp.ge.s32.totalorder %s3054_s15, 4   ;;  %s5264_s9 = smov %s3000_s10 }
 0x235   : > { %s5265_s10 = smov %s3004_s11  ;;  %s5266_s11 = smov %s3065_s18 }
 0x236   : > { %s5267_s12 = smov %s3054_s15  ;;  %14 = sbr.rel (!%p12_p3) target bundleno = 3 (0x3), region = 63 }
 0x23d   :  { %2342 = vsyncpa [#allocation3], 1 }
 0x23e   :  { %2344 = vsyncpa [#allocation3 + $0x1], 1 }

</bundles_post_ra>
